<compile_context>
chip_gen: v7x
topology: tpu7x:2x2x1
jax: 0.10.0
libtpu: 0.0.40
codegen_flags: <defaults>
</compile_context>

<pallas_src>
import math
import functools

import jax
import jax.numpy as jnp
from jax.experimental import pallas as pl
from jax.experimental.pallas import tpu as pltpu  # noqa: F401

NHEAD = 8
LN_EPS = 1e-5           # torch.nn.LayerNorm default
NEG_INF = -1e9          # stand-in for float('-inf'); exp() underflows to 0 identically


# ----------------------------- Pallas kernels -----------------------------

def _embed_pe_kernel(tok_ref, pe_ref, o_ref, *, scale):
    """TokenEmbedding (* sqrt(E)) fused with PositionalEncoding (+ pe[:L]).
    tok: (B, L, E)   pe: (L, E)   dropout is identity (eval mode)."""
    o_ref[...] = tok_ref[...] * scale + pe_ref[...]


def _mha_block_kernel(xq_ref, xkv_ref, mask_ref,
                      wq_ref, bq_ref, wkv_ref, bkv_ref, wo_ref, bo_ref,
                      g_ref, beta_ref, o_ref, *, B, Lq, Lk, H, Dh, scale):
    """Fused multi-head attention block:
       q/kv projection -> per-head softmax attention -> out-proj -> residual -> LN.
       xq: (B*Lq, E) f32, xkv: (B*Lk, E) f32 (batch-major slabs),
       mask: (B, Lq, Lk) additive f32, weights bf16, output (B*Lq, E) f32."""
    E = H * Dh
    xq = xq_ref[...]                                     # (B*Lq, E) f32
    xkv = xkv_ref[...]                                   # (B*Lk, E) f32

    # bf16 MXU matmuls, f32 accumulation.
    q = jnp.dot(xq.astype(jnp.bfloat16), wq_ref[...],
                preferred_element_type=jnp.float32) + bq_ref[...]
    kv = jnp.dot(xkv.astype(jnp.bfloat16), wkv_ref[...],
                 preferred_element_type=jnp.float32) + bkv_ref[...]
    k = kv[:, :E]
    v = kv[:, E:]

    mask = mask_ref[...]                                 # (B, Lq, Lk)

    head_outs = []
    for h in range(H):                                   # static unrolled loop (H tiny)
        sl = slice(h * Dh, (h + 1) * Dh)
        qh = q[:, sl].reshape(B, Lq, Dh)                 # batch-major: free reshape
        kh = k[:, sl].reshape(B, Lk, Dh)
        vh = v[:, sl].reshape(B, Lk, Dh)
        s = jnp.einsum('bqd,bkd->bqk', qh, kh,
                       preferred_element_type=jnp.float32) * scale + mask
        s = s - jnp.max(s, axis=-1, keepdims=True)
        p = jnp.exp(s)
        p = p * pl.reciprocal(jnp.sum(p, axis=-1, keepdims=True), approx=True)
        oh = jnp.einsum('bqk,bkd->bqd', p, vh,
                        preferred_element_type=jnp.float32)
        head_outs.append(oh.reshape(B * Lq, Dh))
    attn = jnp.concatenate(head_outs, axis=-1)           # (B*Lq, E) — head merge in VMEM

    proj = jnp.dot(attn.astype(jnp.bfloat16), wo_ref[...],
                   preferred_element_type=jnp.float32) + bo_ref[...]

    z = xq + proj                                        # residual
    mu = jnp.mean(z, axis=-1, keepdims=True)
    var = jnp.mean(jnp.square(z - mu), axis=-1, keepdims=True)
    o_ref[...] = (z - mu) * jax.lax.rsqrt(var + LN_EPS) * g_ref[...] + beta_ref[...]


def _ffn_block_kernel(x_ref, w1_ref, b1_ref, w2_ref, b2_ref, g_ref, beta_ref, o_ref):
    """Fused feed-forward block: lin1 -> ReLU -> lin2 -> residual -> LayerNorm."""
    x = x_ref[...]                                       # (M, E) f32
    h = jnp.dot(x.astype(jnp.bfloat16), w1_ref[...],
                preferred_element_type=jnp.float32) + b1_ref[...]
    h = jnp.maximum(h, 0.0)                              # ReLU (PyTorch default)
    y = jnp.dot(h.astype(jnp.bfloat16), w2_ref[...],
                preferred_element_type=jnp.float32) + b2_ref[...]
    z = x + y
    mu = jnp.mean(z, axis=-1, keepdims=True)
    var = jnp.mean(jnp.square(z - mu), axis=-1, keepdims=True)
    o_ref[...] = (z - mu) * jax.lax.rsqrt(var + LN_EPS) * g_ref[...] + beta_ref[...]


def _linear_kernel(x_ref, w_ref, b_ref, o_ref):
    """Generator: y = x @ w + b  (bf16 MXU, f32 accumulation)."""
    o_ref[...] = jnp.dot(x_ref[...].astype(jnp.bfloat16), w_ref[...],
                         preferred_element_type=jnp.float32) + b_ref[...]


# ----------------------------- pallas_call wrappers -----------------------------
# Everything fits in VMEM at these shapes, so whole-array blocks (no grid/specs).

def embed_pe(tok, pe, scale):
    B, L, E = tok.shape
    kernel = functools.partial(_embed_pe_kernel, scale=scale)
    return pl.pallas_call(
        kernel, out_shape=jax.ShapeDtypeStruct((B, L, E), jnp.float32),
    )(tok, pe)


def mha_block(xq, xkv, mask, wq, bq, wkv, bkv, wo, bo, gamma, beta, B, Lq, Lk):
    Mq, E = xq.shape
    H = NHEAD
    Dh = E // H
    kernel = functools.partial(_mha_block_kernel, B=B, Lq=Lq, Lk=Lk, H=H, Dh=Dh,
                               scale=1.0 / math.sqrt(Dh))
    return pl.pallas_call(
        kernel, out_shape=jax.ShapeDtypeStruct((Mq, E), jnp.float32),
    )(xq, xkv, mask, wq, bq, wkv, bkv, wo, bo, gamma, beta)


def ffn_block(x, w1, b1, w2, b2, gamma, beta):
    M, E = x.shape
    return pl.pallas_call(
        _ffn_block_kernel, out_shape=jax.ShapeDtypeStruct((M, E), jnp.float32),
    )(x, w1, b1, w2, b2, gamma, beta)


def linear(x, w, b):
    M = x.shape[0]
    N = w.shape[1]
    return pl.pallas_call(
        _linear_kernel, out_shape=jax.ShapeDtypeStruct((M, N), jnp.float32),
    )(x, w, b)


# ----------------------------- model glue (plain JAX) -----------------------------

def _combine_mask(attn_mask, key_padding_mask, B, Lq, Lk):
    """Combine float attn_mask (Lq,Lk) and bool key_padding_mask (B,Lk) into an
    additive (B, Lq, Lk) mask — same semantics as torch MultiheadAttention."""
    m = jnp.zeros((B, Lq, Lk), jnp.float32)
    if attn_mask is not None:
        m = m + attn_mask[None, :, :].astype(jnp.float32)
    if key_padding_mask is not None:
        kp = jnp.where(key_padding_mask, NEG_INF, 0.0).astype(jnp.float32)
        m = m + kp[:, None, :]
    return m


def encoder_layer(x, p, mask, B, L):
    """Post-LN TransformerEncoderLayer (norm_first=False, activation=relu)."""
    sa = p['sa']
    x = mha_block(x, x, mask, sa['wq'], sa['bq'], sa['wkv'], sa['bkv'],
                  sa['wo'], sa['bo'], p['ln1_g'], p['ln1_b'], B, L, L)
    x = ffn_block(x, p['w1'], p['b1'], p['w2'], p['b2'], p['ln2_g'], p['ln2_b'])
    return x


def decoder_layer(x, memory, p, sa_mask, ca_mask, B, Lt, Ls):
    """Post-LN TransformerDecoderLayer."""
    sa, ca = p['sa'], p['ca']
    x = mha_block(x, x, sa_mask, sa['wq'], sa['bq'], sa['wkv'], sa['bkv'],
                  sa['wo'], sa['bo'], p['ln1_g'], p['ln1_b'], B, Lt, Lt)
    x = mha_block(x, memory, ca_mask, ca['wq'], ca['bq'], ca['wkv'], ca['bkv'],
                  ca['wo'], ca['bo'], p['ln2_g'], p['ln2_b'], B, Lt, Ls)
    x = ffn_block(x, p['w1'], p['b1'], p['w2'], p['b2'], p['ln3_g'], p['ln3_b'])
    return x


def transformer_forward(params, src, trg, src_mask, tgt_mask,
                        src_padding_mask, tgt_padding_mask,
                        memory_key_padding_mask):
    pe = params['pos_embedding']                         # (maxlen, E) f32
    E = pe.shape[1]
    Ls, B = src.shape
    Lt = trg.shape[0]
    sqrt_e = math.sqrt(E)

    # Embedding-table gather stays in plain JAX; activations become
    # batch-major (B*L, E) slabs for the rest of the network.
    src_tok = params['src_emb'][src.T]                   # (B, Ls, E)
    tgt_tok = params['tgt_emb'][trg.T]                   # (B, Lt, E)
    src_x = embed_pe(src_tok, pe[:Ls], sqrt_e).reshape(B * Ls, E)
    tgt_x = embed_pe(tgt_tok, pe[:Lt], sqrt_e).reshape(B * Lt, E)

    enc_mask = _combine_mask(src_mask, src_padding_mask, B, Ls, Ls)
    dec_sa_mask = _combine_mask(tgt_mask, tgt_padding_mask, B, Lt, Lt)
    dec_ca_mask = _combine_mask(None, memory_key_padding_mask, B, Lt, Ls)

    memory = src_x
    for p in params['encoder_layers']:
        memory = encoder_layer(memory, p, enc_mask, B, Ls)

    out = tgt_x
    for p in params['decoder_layers']:
        out = decoder_layer(out, memory, p, dec_sa_mask, dec_ca_mask, B, Lt, Ls)

    logits = linear(out, params['gen_w'], params['gen_b'])      # (B*Lt, V)
    V = logits.shape[-1]
    # back to PyTorch's sequence-first (Lt, B, V) layout
    return jnp.transpose(logits.reshape(B, Lt, V), (1, 0, 2))


# ----------------------------- parameter init -----------------------------

def init_params(key, num_encoder_layers, num_decoder_layers, emb_size,
                src_vocab_size, tgt_vocab_size, dim_feedforward, maxlen=64):
    keys = iter(jax.random.split(key, 256))

    def dense(fan_in, fan_out):
        bound = 1.0 / math.sqrt(fan_in)
        w = jax.random.uniform(next(keys), (fan_in, fan_out), jnp.float32,
                               -bound, bound)
        b = jax.random.uniform(next(keys), (fan_out,), jnp.float32,
                               -bound, bound)
        # weights stored bf16 (MXU-native on v6e/v7x); biases stay f32.
        return w.astype(jnp.bfloat16), b.reshape(1, fan_out)

    def mha_params():
        wq, bq = dense(emb_size, emb_size)
        wk, bk = dense(emb_size, emb_size)
        wv, bv = dense(emb_size, emb_size)
        wo, bo = dense(emb_size, emb_size)
        return dict(wq=wq, bq=bq,
                    wkv=jnp.concatenate([wk, wv], axis=1),   # fused K/V proj (E, 2E)
                    bkv=jnp.concatenate([bk, bv], axis=1),   # (1, 2E)
                    wo=wo, bo=bo)

    def ln():
        return (jnp.ones((1, emb_size), jnp.float32),
                jnp.zeros((1, emb_size), jnp.float32))

    def enc_layer():
        w1, b1 = dense(emb_size, dim_feedforward)
        w2, b2 = dense(dim_feedforward, emb_size)
        g1, be1 = ln(); g2, be2 = ln()
        return dict(sa=mha_params(), w1=w1, b1=b1, w2=w2, b2=b2,
                    ln1_g=g1, ln1_b=be1, ln2_g=g2, ln2_b=be2)

    def dec_layer():
        w1, b1 = dense(emb_size, dim_feedforward)
        w2, b2 = dense(dim_feedforward, emb_size)
        g1, be1 = ln(); g2, be2 = ln(); g3, be3 = ln()
        return dict(sa=mha_params(), ca=mha_params(),
                    w1=w1, b1=b1, w2=w2, b2=b2,
                    ln1_g=g1, ln1_b=be1, ln2_g=g2, ln2_b=be2,
                    ln3_g=g3, ln3_b=be3)

    gen_w, gen_b = dense(emb_size, tgt_vocab_size)
    src_emb = jax.random.normal(next(keys), (src_vocab_size, emb_size), jnp.float32)
    tgt_emb = jax.random.normal(next(keys), (tgt_vocab_size, emb_size), jnp.float32)

    # PositionalEncoding buffer (same formula as the PyTorch module)
    den = jnp.exp(-jnp.arange(0, emb_size, 2, dtype=jnp.float32)
                  * math.log(10000.0) / emb_size)
    pos = jnp.arange(0, maxlen, dtype=jnp.float32).reshape(maxlen, 1)
    pe = jnp.zeros((maxlen, emb_size), jnp.float32)
    pe = pe.at[:, 0::2].set(jnp.sin(pos * den))
    pe = pe.at[:, 1::2].set(jnp.cos(pos * den))

    return dict(
        encoder_layers=[enc_layer() for _ in range(num_encoder_layers)],
        decoder_layers=[dec_layer() for _ in range(num_decoder_layers)],
        gen_w=gen_w, gen_b=gen_b,
        src_emb=src_emb, tgt_emb=tgt_emb,
        pos_embedding=pe,                                # (maxlen, E)
    )


# ----------------------------- driver -----------------------------

if __name__ == "__main__":
    EMB = 64          # emb_size (head_dim = 8 with NHEAD = 8)
    DFF = 128         # dim_feedforward
    N_ENC = 2
    N_DEC = 2
    SRC_VOCAB = 72
    TGT_VOCAB = 88
    LS = 8            # source sequence length
    LT = 8            # target sequence length
    B = 2             # batch size

    root = jax.random.PRNGKey(0)
    pkey, skey, tkey = jax.random.split(root, 3)

    params = init_params(pkey, N_ENC, N_DEC, EMB, SRC_VOCAB, TGT_VOCAB, DFF)

    src = jax.random.randint(skey, (LS, B), 0, SRC_VOCAB, dtype=jnp.int32)
    trg = jax.random.randint(tkey, (LT, B), 0, TGT_VOCAB, dtype=jnp.int32)

    src_mask = jnp.zeros((LS, LS), jnp.float32)
    tgt_mask = jnp.where(jnp.triu(jnp.ones((LT, LT), jnp.float32), k=1) > 0,
                         NEG_INF, 0.0).astype(jnp.float32)        # causal
    src_padding_mask = jnp.array(
        [[False] * LS, [False] * (LS - 2) + [True] * 2], dtype=bool)
    tgt_padding_mask = jnp.array(
        [[False] * LT, [False] * (LT - 3) + [True] * 3], dtype=bool)
    memory_key_padding_mask = src_padding_mask

    fwd = jax.jit(transformer_forward)
    out = fwd(params, src, trg, src_mask, tgt_mask,
              src_padding_mask, tgt_padding_mask, memory_key_padding_mask)
    out = jax.block_until_ready(out)

    assert out.shape == (LT, B, TGT_VOCAB), out.shape
    assert bool(jnp.all(jnp.isfinite(out)))
    print("KERNEL_OK")
</pallas_src>

<mosaic_0001>
module attributes {stable_mosaic.version = 11 : i64} {
  func.func @_embed_pe_kernel(%arg0: memref<2x8x64xf32, #tpu.memory_space<vmem>>, %arg1: memref<8x64xf32, #tpu.memory_space<vmem>>, %arg2: memref<2x8x64xf32, #tpu.memory_space<vmem>>) attributes {dimension_semantics = [], scalar_prefetch = 0 : i64, scratch_operands = 0 : i64, tpu.core_type = #tpu.core_type<tc>} {
    %c0 = arith.constant 0 : index
    %c0_0 = arith.constant 0 : index
    %c0_1 = arith.constant 0 : index
    %0 = vector.load %arg0[%c0, %c0_0, %c0_1] : memref<2x8x64xf32, #tpu.memory_space<vmem>>, vector<2x8x64xf32>
    %cst = arith.constant 8.000000e+00 : f32
    %1 = vector.broadcast %cst : f32 to vector<2x8x64xf32>
    %2 = arith.mulf %0, %1 : vector<2x8x64xf32>
    %c0_2 = arith.constant 0 : index
    %c0_3 = arith.constant 0 : index
    %3 = vector.load %arg1[%c0_2, %c0_3] : memref<8x64xf32, #tpu.memory_space<vmem>>, vector<8x64xf32>
    %4 = vector.shape_cast %3 : vector<8x64xf32> to vector<1x8x64xf32>
    %5 = vector.broadcast %4 : vector<1x8x64xf32> to vector<2x8x64xf32>
    %6 = arith.addf %2, %5 : vector<2x8x64xf32>
    %c0_4 = arith.constant 0 : index
    %c0_5 = arith.constant 0 : index
    %c0_6 = arith.constant 0 : index
    %7 = vector.load %arg2[%c0_4, %c0_5, %c0_6] : memref<2x8x64xf32, #tpu.memory_space<vmem>>, vector<2x8x64xf32>
    tpu.vector_store %arg2[%c0_4, %c0_5, %c0_6], %6 {strides = array<i32>} : memref<2x8x64xf32, #tpu.memory_space<vmem>>, vector<2x8x64xf32>,
    return
  }
}

module attributes {stable_mosaic.version = 11 : i64} {
  func.func @_ffn_block_kernel(%arg0: memref<16x64xf32, #tpu.memory_space<vmem>>, %arg1: memref<64x128xbf16, #tpu.memory_space<vmem>>, %arg2: memref<1x128xf32, #tpu.memory_space<vmem>>, %arg3: memref<128x64xbf16, #tpu.memory_space<vmem>>, %arg4: memref<1x64xf32, #tpu.memory_space<vmem>>, %arg5: memref<1x64xf32, #tpu.memory_space<vmem>>, %arg6: memref<1x64xf32, #tpu.memory_space<vmem>>, %arg7: memref<16x64xf32, #tpu.memory_space<vmem>>) attributes {dimension_semantics = [], scalar_prefetch = 0 : i64, scratch_operands = 0 : i64, tpu.core_type = #tpu.core_type<tc>} {
    %c0 = arith.constant 0 : index
    %c0_0 = arith.constant 0 : index
    %0 = vector.load %arg0[%c0, %c0_0] : memref<16x64xf32, #tpu.memory_space<vmem>>, vector<16x64xf32>
    %1 = arith.truncf %0 : vector<16x64xf32> to vector<16x64xbf16>
    %c0_1 = arith.constant 0 : index
    %c0_2 = arith.constant 0 : index
    %2 = vector.load %arg1[%c0_1, %c0_2] : memref<64x128xbf16, #tpu.memory_space<vmem>>, vector<64x128xbf16>
    %cst = arith.constant dense<0.000000e+00> : vector<16x128xf32>
    %3 = tpu.matmul %1, %2, %cst {dimension_numbers = #tpu.dot_dimension_numbers<[1], [0], [0], [1], [0, 0, 1, 1], [], []>} : vector<16x64xbf16>, vector<64x128xbf16>, vector<16x128xf32> -> vector<16x128xf32>
    %c0_3 = arith.constant 0 : index
    %c0_4 = arith.constant 0 : index
    %4 = vector.load %arg2[%c0_3, %c0_4] : memref<1x128xf32, #tpu.memory_space<vmem>>, vector<1x128xf32>
    %5 = vector.broadcast %4 : vector<1x128xf32> to vector<16x128xf32>
    %6 = arith.addf %3, %5 : vector<16x128xf32>
    %cst_5 = arith.constant 0.000000e+00 : f32
    %7 = vector.broadcast %cst_5 : f32 to vector<16x128xf32>
    %8 = arith.maximumf %6, %7 : vector<16x128xf32>
    %9 = arith.truncf %8 : vector<16x128xf32> to vector<16x128xbf16>
    %c0_6 = arith.constant 0 : index
    %c0_7 = arith.constant 0 : index
    %10 = vector.load %arg3[%c0_6, %c0_7] : memref<128x64xbf16, #tpu.memory_space<vmem>>, vector<128x64xbf16>
    %cst_8 = arith.constant dense<0.000000e+00> : vector<16x64xf32>
    %11 = tpu.matmul %9, %10, %cst_8 {dimension_numbers = #tpu.dot_dimension_numbers<[1], [0], [0], [1], [0, 0, 1, 1], [], []>} : vector<16x128xbf16>, vector<128x64xbf16>, vector<16x64xf32> -> vector<16x64xf32>
    %c0_9 = arith.constant 0 : index
    %c0_10 = arith.constant 0 : index
    %12 = vector.load %arg4[%c0_9, %c0_10] : memref<1x64xf32, #tpu.memory_space<vmem>>, vector<1x64xf32>
    %13 = vector.broadcast %12 : vector<1x64xf32> to vector<16x64xf32>
    %14 = arith.addf %11, %13 : vector<16x64xf32>
    %15 = arith.addf %0, %14 : vector<16x64xf32>
    %cst_11 = arith.constant dense<0.000000e+00> : vector<16xf32>
    %16 = vector.multi_reduction <add>, %15, %cst_11 [1] : vector<16x64xf32> to vector<16xf32>
    %17 = vector.shape_cast %16 : vector<16xf32> to vector<16x1xf32>
    %cst_12 = arith.constant 6.400000e+01 : f32
    %18 = vector.broadcast %cst_12 : f32 to vector<16x1xf32>
    %19 = arith.divf %17, %18 : vector<16x1xf32>
    %20 = vector.broadcast %19 : vector<16x1xf32> to vector<16x64xf32>
    %21 = arith.subf %15, %20 : vector<16x64xf32>
    %22 = arith.mulf %21, %21 : vector<16x64xf32>
    %cst_13 = arith.constant dense<0.000000e+00> : vector<16xf32>
    %23 = vector.multi_reduction <add>, %22, %cst_13 [1] : vector<16x64xf32> to vector<16xf32>
    %24 = vector.shape_cast %23 : vector<16xf32> to vector<16x1xf32>
    %cst_14 = arith.constant 6.400000e+01 : f32
    %25 = vector.broadcast %cst_14 : f32 to vector<16x1xf32>
    %26 = arith.divf %24, %25 : vector<16x1xf32>
    %27 = vector.broadcast %19 : vector<16x1xf32> to vector<16x64xf32>
    %28 = arith.subf %15, %27 : vector<16x64xf32>
    %cst_15 = arith.constant 9.99999974E-6 : f32
    %29 = vector.broadcast %cst_15 : f32 to vector<16x1xf32>
    %30 = arith.addf %26, %29 : vector<16x1xf32>
    %31 = math.rsqrt %30 : vector<16x1xf32>
    %32 = vector.broadcast %31 : vector<16x1xf32> to vector<16x64xf32>
    %33 = arith.mulf %28, %32 : vector<16x64xf32>
    %c0_16 = arith.constant 0 : index
    %c0_17 = arith.constant 0 : index
    %34 = vector.load %arg5[%c0_16, %c0_17] : memref<1x64xf32, #tpu.memory_space<vmem>>, vector<1x64xf32>
    %35 = vector.broadcast %34 : vector<1x64xf32> to vector<16x64xf32>
    %36 = arith.mulf %33, %35 : vector<16x64xf32>
    %c0_18 = arith.constant 0 : index
    %c0_19 = arith.constant 0 : index
    %37 = vector.load %arg6[%c0_18, %c0_19] : memref<1x64xf32, #tpu.memory_space<vmem>>, vector<1x64xf32>
    %38 = vector.broadcast %37 : vector<1x64xf32> to vector<16x64xf32>
    %39 = arith.addf %36, %38 : vector<16x64xf32>
    %c0_20 = arith.constant 0 : index
    %c0_21 = arith.constant 0 : index
    %40 = vector.load %arg7[%c0_20, %c0_21] : memref<16x64xf32, #tpu.memory_space<vmem>>, vector<16x64xf32>
    tpu.vector_store %arg7[%c0_20, %c0_21], %39 {strides = array<i32>} : memref<16x64xf32, #tpu.memory_space<vmem>>, vector<16x64xf32>,
    return
  }
}

module attributes {stable_mosaic.version = 11 : i64} {
  func.func @_mha_block_kernel(%arg0: memref<16x64xf32, #tpu.memory_space<vmem>>, %arg1: memref<16x64xf32, #tpu.memory_space<vmem>>, %arg2: memref<2x8x8xf32, #tpu.memory_space<vmem>>, %arg3: memref<64x64xbf16, #tpu.memory_space<vmem>>, %arg4: memref<1x64xf32, #tpu.memory_space<vmem>>, %arg5: memref<64x128xbf16, #tpu.memory_space<vmem>>, %arg6: memref<1x128xf32, #tpu.memory_space<vmem>>, %arg7: memref<64x64xbf16, #tpu.memory_space<vmem>>, %arg8: memref<1x64xf32, #tpu.memory_space<vmem>>, %arg9: memref<1x64xf32, #tpu.memory_space<vmem>>, %arg10: memref<1x64xf32, #tpu.memory_space<vmem>>, %arg11: memref<16x64xf32, #tpu.memory_space<vmem>>) attributes {dimension_semantics = [], scalar_prefetch = 0 : i64, scratch_operands = 0 : i64, tpu.core_type = #tpu.core_type<tc>} {
    %c0 = arith.constant 0 : index
    %c0_0 = arith.constant 0 : index
    %0 = vector.load %arg0[%c0, %c0_0] : memref<16x64xf32, #tpu.memory_space<vmem>>, vector<16x64xf32>
    %c0_1 = arith.constant 0 : index
    %c0_2 = arith.constant 0 : index
    %1 = vector.load %arg1[%c0_1, %c0_2] : memref<16x64xf32, #tpu.memory_space<vmem>>, vector<16x64xf32>
    %2 = arith.truncf %0 : vector<16x64xf32> to vector<16x64xbf16>
    %c0_3 = arith.constant 0 : index
    %c0_4 = arith.constant 0 : index
    %3 = vector.load %arg3[%c0_3, %c0_4] : memref<64x64xbf16, #tpu.memory_space<vmem>>, vector<64x64xbf16>
    %cst = arith.constant dense<0.000000e+00> : vector<16x64xf32>
    %4 = tpu.matmul %2, %3, %cst {dimension_numbers = #tpu.dot_dimension_numbers<[1], [0], [0], [1], [0, 0, 1, 1], [], []>} : vector<16x64xbf16>, vector<64x64xbf16>, vector<16x64xf32> -> vector<16x64xf32>
    %c0_5 = arith.constant 0 : index
    %c0_6 = arith.constant 0 : index
    %5 = vector.load %arg4[%c0_5, %c0_6] : memref<1x64xf32, #tpu.memory_space<vmem>>, vector<1x64xf32>
    %6 = vector.broadcast %5 : vector<1x64xf32> to vector<16x64xf32>
    %7 = arith.addf %4, %6 : vector<16x64xf32>
    %8 = arith.truncf %1 : vector<16x64xf32> to vector<16x64xbf16>
    %c0_7 = arith.constant 0 : index
    %c0_8 = arith.constant 0 : index
    %9 = vector.load %arg5[%c0_7, %c0_8] : memref<64x128xbf16, #tpu.memory_space<vmem>>, vector<64x128xbf16>
    %cst_9 = arith.constant dense<0.000000e+00> : vector<16x128xf32>
    %10 = tpu.matmul %8, %9, %cst_9 {dimension_numbers = #tpu.dot_dimension_numbers<[1], [0], [0], [1], [0, 0, 1, 1], [], []>} : vector<16x64xbf16>, vector<64x128xbf16>, vector<16x128xf32> -> vector<16x128xf32>
    %c0_10 = arith.constant 0 : index
    %c0_11 = arith.constant 0 : index
    %11 = vector.load %arg6[%c0_10, %c0_11] : memref<1x128xf32, #tpu.memory_space<vmem>>, vector<1x128xf32>
    %12 = vector.broadcast %11 : vector<1x128xf32> to vector<16x128xf32>
    %13 = arith.addf %10, %12 : vector<16x128xf32>
    %14 = vector.extract_strided_slice %13 {offsets = [0, 0], sizes = [16, 64], strides = [1, 1]} : vector<16x128xf32> to vector<16x64xf32>
    %15 = vector.extract_strided_slice %13 {offsets = [0, 64], sizes = [16, 64], strides = [1, 1]} : vector<16x128xf32> to vector<16x64xf32>
    %c0_12 = arith.constant 0 : index
    %c0_13 = arith.constant 0 : index
    %c0_14 = arith.constant 0 : index
    %16 = vector.load %arg2[%c0_12, %c0_13, %c0_14] : memref<2x8x8xf32, #tpu.memory_space<vmem>>, vector<2x8x8xf32>
    %17 = vector.extract_strided_slice %7 {offsets = [0, 0], sizes = [16, 8], strides = [1, 1]} : vector<16x64xf32> to vector<16x8xf32>
    %18 = vector.shape_cast %17 : vector<16x8xf32> to vector<2x8x8xf32>
    %19 = vector.extract_strided_slice %14 {offsets = [0, 0], sizes = [16, 8], strides = [1, 1]} : vector<16x64xf32> to vector<16x8xf32>
    %20 = vector.shape_cast %19 : vector<16x8xf32> to vector<2x8x8xf32>
    %21 = vector.extract_strided_slice %15 {offsets = [0, 0], sizes = [16, 8], strides = [1, 1]} : vector<16x64xf32> to vector<16x8xf32>
    %22 = vector.shape_cast %21 : vector<16x8xf32> to vector<2x8x8xf32>
    "tpu.trace_start"() <{level = 10 : i32, message = "bqd,bkd->bqk"}> : () -> ()
    %cst_15 = arith.constant dense<0.000000e+00> : vector<2x8x8xf32>
    %23 = tpu.matmul %18, %20, %cst_15 {dimension_numbers = #tpu.dot_dimension_numbers<[2], [2], [1], [1], [0, 0, 0, 1, 1, 1], [0], [0]>} : vector<2x8x8xf32>, vector<2x8x8xf32>, vector<2x8x8xf32> -> vector<2x8x8xf32>
    "tpu.trace_stop"() : () -> ()
    %cst_16 = arith.constant 0.353553385 : f32
    %24 = vector.broadcast %cst_16 : f32 to vector<2x8x8xf32>
    %25 = arith.mulf %23, %24 : vector<2x8x8xf32>
    %26 = arith.addf %25, %16 : vector<2x8x8xf32>
    %cst_17 = arith.constant dense<0xFF800000> : vector<2x8xf32>
    %27 = vector.multi_reduction <maximumf>, %26, %cst_17 [2] : vector<2x8x8xf32> to vector<2x8xf32>
    %28 = vector.shape_cast %27 : vector<2x8xf32> to vector<2x8x1xf32>
    %29 = vector.broadcast %28 : vector<2x8x1xf32> to vector<2x8x8xf32>
    %30 = arith.subf %26, %29 : vector<2x8x8xf32>
    %31 = math.exp %30 : vector<2x8x8xf32>
    %cst_18 = arith.constant dense<0.000000e+00> : vector<2x8xf32>
    %32 = vector.multi_reduction <add>, %31, %cst_18 [2] : vector<2x8x8xf32> to vector<2x8xf32>
    %33 = vector.shape_cast %32 : vector<2x8xf32> to vector<2x8x1xf32>
    %34 = tpu.reciprocal %33 {approx = true} : vector<2x8x1xf32> -> vector<2x8x1xf32>
    %35 = vector.broadcast %34 : vector<2x8x1xf32> to vector<2x8x8xf32>
    %36 = arith.mulf %31, %35 : vector<2x8x8xf32>
    "tpu.trace_start"() <{level = 10 : i32, message = "bqk,bkd->bqd"}> : () -> ()
    %cst_19 = arith.constant dense<0.000000e+00> : vector<2x8x8xf32>
    %37 = tpu.matmul %36, %22, %cst_19 {dimension_numbers = #tpu.dot_dimension_numbers<[2], [1], [1], [2], [0, 0, 0, 1, 1, 2], [0], [0]>} : vector<2x8x8xf32>, vector<2x8x8xf32>, vector<2x8x8xf32> -> vector<2x8x8xf32>
    "tpu.trace_stop"() : () -> ()
    %38 = vector.shape_cast %37 : vector<2x8x8xf32> to vector<16x8xf32>
    %39 = vector.extract_strided_slice %7 {offsets = [0, 8], sizes = [16, 8], strides = [1, 1]} : vector<16x64xf32> to vector<16x8xf32>
    %40 = vector.shape_cast %39 : vector<16x8xf32> to vector<2x8x8xf32>
    %41 = vector.extract_strided_slice %14 {offsets = [0, 8], sizes = [16, 8], strides = [1, 1]} : vector<16x64xf32> to vector<16x8xf32>
    %42 = vector.shape_cast %41 : vector<16x8xf32> to vector<2x8x8xf32>
    %43 = vector.extract_strided_slice %15 {offsets = [0, 8], sizes = [16, 8], strides = [1, 1]} : vector<16x64xf32> to vector<16x8xf32>
    %44 = vector.shape_cast %43 : vector<16x8xf32> to vector<2x8x8xf32>
    "tpu.trace_start"() <{level = 10 : i32, message = "bqd,bkd->bqk"}> : () -> ()
    %cst_20 = arith.constant dense<0.000000e+00> : vector<2x8x8xf32>
    %45 = tpu.matmul %40, %42, %cst_20 {dimension_numbers = #tpu.dot_dimension_numbers<[2], [2], [1], [1], [0, 0, 0, 1, 1, 1], [0], [0]>} : vector<2x8x8xf32>, vector<2x8x8xf32>, vector<2x8x8xf32> -> vector<2x8x8xf32>
    "tpu.trace_stop"() : () -> ()
    %cst_21 = arith.constant 0.353553385 : f32
    %46 = vector.broadcast %cst_21 : f32 to vector<2x8x8xf32>
    %47 = arith.mulf %45, %46 : vector<2x8x8xf32>
    %48 = arith.addf %47, %16 : vector<2x8x8xf32>
    %cst_22 = arith.constant dense<0xFF800000> : vector<2x8xf32>
    %49 = vector.multi_reduction <maximumf>, %48, %cst_22 [2] : vector<2x8x8xf32> to vector<2x8xf32>
    %50 = vector.shape_cast %49 : vector<2x8xf32> to vector<2x8x1xf32>
    %51 = vector.broadcast %50 : vector<2x8x1xf32> to vector<2x8x8xf32>
    %52 = arith.subf %48, %51 : vector<2x8x8xf32>
    %53 = math.exp %52 : vector<2x8x8xf32>
    %cst_23 = arith.constant dense<0.000000e+00> : vector<2x8xf32>
    %54 = vector.multi_reduction <add>, %53, %cst_23 [2] : vector<2x8x8xf32> to vector<2x8xf32>
    %55 = vector.shape_cast %54 : vector<2x8xf32> to vector<2x8x1xf32>
    %56 = tpu.reciprocal %55 {approx = true} : vector<2x8x1xf32> -> vector<2x8x1xf32>
    %57 = vector.broadcast %56 : vector<2x8x1xf32> to vector<2x8x8xf32>
    %58 = arith.mulf %53, %57 : vector<2x8x8xf32>
    "tpu.trace_start"() <{level = 10 : i32, message = "bqk,bkd->bqd"}> : () -> ()
    %cst_24 = arith.constant dense<0.000000e+00> : vector<2x8x8xf32>
    %59 = tpu.matmul %58, %44, %cst_24 {dimension_numbers = #tpu.dot_dimension_numbers<[2], [1], [1], [2], [0, 0, 0, 1, 1, 2], [0], [0]>} : vector<2x8x8xf32>, vector<2x8x8xf32>, vector<2x8x8xf32> -> vector<2x8x8xf32>
    "tpu.trace_stop"() : () -> ()
    %60 = vector.shape_cast %59 : vector<2x8x8xf32> to vector<16x8xf32>
    %61 = vector.extract_strided_slice %7 {offsets = [0, 16], sizes = [16, 8], strides = [1, 1]} : vector<16x64xf32> to vector<16x8xf32>
    %62 = vector.shape_cast %61 : vector<16x8xf32> to vector<2x8x8xf32>
    %63 = vector.extract_strided_slice %14 {offsets = [0, 16], sizes = [16, 8], strides = [1, 1]} : vector<16x64xf32> to vector<16x8xf32>
    %64 = vector.shape_cast %63 : vector<16x8xf32> to vector<2x8x8xf32>
    %65 = vector.extract_strided_slice %15 {offsets = [0, 16], sizes = [16, 8], strides = [1, 1]} : vector<16x64xf32> to vector<16x8xf32>
    %66 = vector.shape_cast %65 : vector<16x8xf32> to vector<2x8x8xf32>
    "tpu.trace_start"() <{level = 10 : i32, message = "bqd,bkd->bqk"}> : () -> ()
    %cst_25 = arith.constant dense<0.000000e+00> : vector<2x8x8xf32>
    %67 = tpu.matmul %62, %64, %cst_25 {dimension_numbers = #tpu.dot_dimension_numbers<[2], [2], [1], [1], [0, 0, 0, 1, 1, 1], [0], [0]>} : vector<2x8x8xf32>, vector<2x8x8xf32>, vector<2x8x8xf32> -> vector<2x8x8xf32>
    "tpu.trace_stop"() : () -> ()
    %cst_26 = arith.constant 0.353553385 : f32
    %68 = vector.broadcast %cst_26 : f32 to vector<2x8x8xf32>
    %69 = arith.mulf %67, %68 : vector<2x8x8xf32>
    %70 = arith.addf %69, %16 : vector<2x8x8xf32>
    %cst_27 = arith.constant dense<0xFF800000> : vector<2x8xf32>
    %71 = vector.multi_reduction <maximumf>, %70, %cst_27 [2] : vector<2x8x8xf32> to vector<2x8xf32>
    %72 = vector.shape_cast %71 : vector<2x8xf32> to vector<2x8x1xf32>
    %73 = vector.broadcast %72 : vector<2x8x1xf32> to vector<2x8x8xf32>
    %74 = arith.subf %70, %73 : vector<2x8x8xf32>
    %75 = math.exp %74 : vector<2x8x8xf32>
    %cst_28 = arith.constant dense<0.000000e+00> : vector<2x8xf32>
    %76 = vector.multi_reduction <add>, %75, %cst_28 [2] : vector<2x8x8xf32> to vector<2x8xf32>
    %77 = vector.shape_cast %76 : vector<2x8xf32> to vector<2x8x1xf32>
    %78 = tpu.reciprocal %77 {approx = true} : vector<2x8x1xf32> -> vector<2x8x1xf32>
    %79 = vector.broadcast %78 : vector<2x8x1xf32> to vector<2x8x8xf32>
    %80 = arith.mulf %75, %79 : vector<2x8x8xf32>
    "tpu.trace_start"() <{level = 10 : i32, message = "bqk,bkd->bqd"}> : () -> ()
    %cst_29 = arith.constant dense<0.000000e+00> : vector<2x8x8xf32>
    %81 = tpu.matmul %80, %66, %cst_29 {dimension_numbers = #tpu.dot_dimension_numbers<[2], [1], [1], [2], [0, 0, 0, 1, 1, 2], [0], [0]>} : vector<2x8x8xf32>, vector<2x8x8xf32>, vector<2x8x8xf32> -> vector<2x8x8xf32>
    "tpu.trace_stop"() : () -> ()
    %82 = vector.shape_cast %81 : vector<2x8x8xf32> to vector<16x8xf32>
    %83 = vector.extract_strided_slice %7 {offsets = [0, 24], sizes = [16, 8], strides = [1, 1]} : vector<16x64xf32> to vector<16x8xf32>
    %84 = vector.shape_cast %83 : vector<16x8xf32> to vector<2x8x8xf32>
    %85 = vector.extract_strided_slice %14 {offsets = [0, 24], sizes = [16, 8], strides = [1, 1]} : vector<16x64xf32> to vector<16x8xf32>
    %86 = vector.shape_cast %85 : vector<16x8xf32> to vector<2x8x8xf32>
    %87 = vector.extract_strided_slice %15 {offsets = [0, 24], sizes = [16, 8], strides = [1, 1]} : vector<16x64xf32> to vector<16x8xf32>
    %88 = vector.shape_cast %87 : vector<16x8xf32> to vector<2x8x8xf32>
    "tpu.trace_start"() <{level = 10 : i32, message = "bqd,bkd->bqk"}> : () -> ()
    %cst_30 = arith.constant dense<0.000000e+00> : vector<2x8x8xf32>
    %89 = tpu.matmul %84, %86, %cst_30 {dimension_numbers = #tpu.dot_dimension_numbers<[2], [2], [1], [1], [0, 0, 0, 1, 1, 1], [0], [0]>} : vector<2x8x8xf32>, vector<2x8x8xf32>, vector<2x8x8xf32> -> vector<2x8x8xf32>
    "tpu.trace_stop"() : () -> ()
    %cst_31 = arith.constant 0.353553385 : f32
    %90 = vector.broadcast %cst_31 : f32 to vector<2x8x8xf32>
    %91 = arith.mulf %89, %90 : vector<2x8x8xf32>
    %92 = arith.addf %91, %16 : vector<2x8x8xf32>
    %cst_32 = arith.constant dense<0xFF800000> : vector<2x8xf32>
    %93 = vector.multi_reduction <maximumf>, %92, %cst_32 [2] : vector<2x8x8xf32> to vector<2x8xf32>
    %94 = vector.shape_cast %93 : vector<2x8xf32> to vector<2x8x1xf32>
    %95 = vector.broadcast %94 : vector<2x8x1xf32> to vector<2x8x8xf32>
    %96 = arith.subf %92, %95 : vector<2x8x8xf32>
    %97 = math.exp %96 : vector<2x8x8xf32>
    %cst_33 = arith.constant dense<0.000000e+00> : vector<2x8xf32>
    %98 = vector.multi_reduction <add>, %97, %cst_33 [2] : vector<2x8x8xf32> to vector<2x8xf32>
    %99 = vector.shape_cast %98 : vector<2x8xf32> to vector<2x8x1xf32>
    %100 = tpu.reciprocal %99 {approx = true} : vector<2x8x1xf32> -> vector<2x8x1xf32>
    %101 = vector.broadcast %100 : vector<2x8x1xf32> to vector<2x8x8xf32>
    %102 = arith.mulf %97, %101 : vector<2x8x8xf32>
    "tpu.trace_start"() <{level = 10 : i32, message = "bqk,bkd->bqd"}> : () -> ()
    %cst_34 = arith.constant dense<0.000000e+00> : vector<2x8x8xf32>
    %103 = tpu.matmul %102, %88, %cst_34 {dimension_numbers = #tpu.dot_dimension_numbers<[2], [1], [1], [2], [0, 0, 0, 1, 1, 2], [0], [0]>} : vector<2x8x8xf32>, vector<2x8x8xf32>, vector<2x8x8xf32> -> vector<2x8x8xf32>
    "tpu.trace_stop"() : () -> ()
    %104 = vector.shape_cast %103 : vector<2x8x8xf32> to vector<16x8xf32>
    %105 = vector.extract_strided_slice %7 {offsets = [0, 32], sizes = [16, 8], strides = [1, 1]} : vector<16x64xf32> to vector<16x8xf32>
    %106 = vector.shape_cast %105 : vector<16x8xf32> to vector<2x8x8xf32>
    %107 = vector.extract_strided_slice %14 {offsets = [0, 32], sizes = [16, 8], strides = [1, 1]} : vector<16x64xf32> to vector<16x8xf32>
    %108 = vector.shape_cast %107 : vector<16x8xf32> to vector<2x8x8xf32>
    %109 = vector.extract_strided_slice %15 {offsets = [0, 32], sizes = [16, 8], strides = [1, 1]} : vector<16x64xf32> to vector<16x8xf32>
    %110 = vector.shape_cast %109 : vector<16x8xf32> to vector<2x8x8xf32>
    "tpu.trace_start"() <{level = 10 : i32, message = "bqd,bkd->bqk"}> : () -> ()
    %cst_35 = arith.constant dense<0.000000e+00> : vector<2x8x8xf32>
    %111 = tpu.matmul %106, %108, %cst_35 {dimension_numbers = #tpu.dot_dimension_numbers<[2], [2], [1], [1], [0, 0, 0, 1, 1, 1], [0], [0]>} : vector<2x8x8xf32>, vector<2x8x8xf32>, vector<2x8x8xf32> -> vector<2x8x8xf32>
    "tpu.trace_stop"() : () -> ()
    %cst_36 = arith.constant 0.353553385 : f32
    %112 = vector.broadcast %cst_36 : f32 to vector<2x8x8xf32>
    %113 = arith.mulf %111, %112 : vector<2x8x8xf32>
    %114 = arith.addf %113, %16 : vector<2x8x8xf32>
    %cst_37 = arith.constant dense<0xFF800000> : vector<2x8xf32>
    %115 = vector.multi_reduction <maximumf>, %114, %cst_37 [2] : vector<2x8x8xf32> to vector<2x8xf32>
    %116 = vector.shape_cast %115 : vector<2x8xf32> to vector<2x8x1xf32>
    %117 = vector.broadcast %116 : vector<2x8x1xf32> to vector<2x8x8xf32>
    %118 = arith.subf %114, %117 : vector<2x8x8xf32>
    %119 = math.exp %118 : vector<2x8x8xf32>
    %cst_38 = arith.constant dense<0.000000e+00> : vector<2x8xf32>
    %120 = vector.multi_reduction <add>, %119, %cst_38 [2] : vector<2x8x8xf32> to vector<2x8xf32>
    %121 = vector.shape_cast %120 : vector<2x8xf32> to vector<2x8x1xf32>
    %122 = tpu.reciprocal %121 {approx = true} : vector<2x8x1xf32> -> vector<2x8x1xf32>
    %123 = vector.broadcast %122 : vector<2x8x1xf32> to vector<2x8x8xf32>
    %124 = arith.mulf %119, %123 : vector<2x8x8xf32>
    "tpu.trace_start"() <{level = 10 : i32, message = "bqk,bkd->bqd"}> : () -> ()
    %cst_39 = arith.constant dense<0.000000e+00> : vector<2x8x8xf32>
    %125 = tpu.matmul %124, %110, %cst_39 {dimension_numbers = #tpu.dot_dimension_numbers<[2], [1], [1], [2], [0, 0, 0, 1, 1, 2], [0], [0]>} : vector<2x8x8xf32>, vector<2x8x8xf32>, vector<2x8x8xf32> -> vector<2x8x8xf32>
    "tpu.trace_stop"() : () -> ()
    %126 = vector.shape_cast %125 : vector<2x8x8xf32> to vector<16x8xf32>
    %127 = vector.extract_strided_slice %7 {offsets = [0, 40], sizes = [16, 8], strides = [1, 1]} : vector<16x64xf32> to vector<16x8xf32>
    %128 = vector.shape_cast %127 : vector<16x8xf32> to vector<2x8x8xf32>
    %129 = vector.extract_strided_slice %14 {offsets = [0, 40], sizes = [16, 8], strides = [1, 1]} : vector<16x64xf32> to vector<16x8xf32>
    %130 = vector.shape_cast %129 : vector<16x8xf32> to vector<2x8x8xf32>
    %131 = vector.extract_strided_slice %15 {offsets = [0, 40], sizes = [16, 8], strides = [1, 1]} : vector<16x64xf32> to vector<16x8xf32>
    %132 = vector.shape_cast %131 : vector<16x8xf32> to vector<2x8x8xf32>
    "tpu.trace_start"() <{level = 10 : i32, message = "bqd,bkd->bqk"}> : () -> ()
    %cst_40 = arith.constant dense<0.000000e+00> : vector<2x8x8xf32>
    %133 = tpu.matmul %128, %130, %cst_40 {dimension_numbers = #tpu.dot_dimension_numbers<[2], [2], [1], [1], [0, 0, 0, 1, 1, 1], [0], [0]>} : vector<2x8x8xf32>, vector<2x8x8xf32>, vector<2x8x8xf32> -> vector<2x8x8xf32>
    "tpu.trace_stop"() : () -> ()
    %cst_41 = arith.constant 0.353553385 : f32
    %134 = vector.broadcast %cst_41 : f32 to vector<2x8x8xf32>
    %135 = arith.mulf %133, %134 : vector<2x8x8xf32>
    %136 = arith.addf %135, %16 : vector<2x8x8xf32>
    %cst_42 = arith.constant dense<0xFF800000> : vector<2x8xf32>
    %137 = vector.multi_reduction <maximumf>, %136, %cst_42 [2] : vector<2x8x8xf32> to vector<2x8xf32>
    %138 = vector.shape_cast %137 : vector<2x8xf32> to vector<2x8x1xf32>
    %139 = vector.broadcast %138 : vector<2x8x1xf32> to vector<2x8x8xf32>
    %140 = arith.subf %136, %139 : vector<2x8x8xf32>
    %141 = math.exp %140 : vector<2x8x8xf32>
    %cst_43 = arith.constant dense<0.000000e+00> : vector<2x8xf32>
    %142 = vector.multi_reduction <add>, %141, %cst_43 [2] : vector<2x8x8xf32> to vector<2x8xf32>
    %143 = vector.shape_cast %142 : vector<2x8xf32> to vector<2x8x1xf32>
    %144 = tpu.reciprocal %143 {approx = true} : vector<2x8x1xf32> -> vector<2x8x1xf32>
    %145 = vector.broadcast %144 : vector<2x8x1xf32> to vector<2x8x8xf32>
    %146 = arith.mulf %141, %145 : vector<2x8x8xf32>
    "tpu.trace_start"() <{level = 10 : i32, message = "bqk,bkd->bqd"}> : () -> ()
    %cst_44 = arith.constant dense<0.000000e+00> : vector<2x8x8xf32>
    %147 = tpu.matmul %146, %132, %cst_44 {dimension_numbers = #tpu.dot_dimension_numbers<[2], [1], [1], [2], [0, 0, 0, 1, 1, 2], [0], [0]>} : vector<2x8x8xf32>, vector<2x8x8xf32>, vector<2x8x8xf32> -> vector<2x8x8xf32>
    "tpu.trace_stop"() : () -> ()
    %148 = vector.shape_cast %147 : vector<2x8x8xf32> to vector<16x8xf32>
    %149 = vector.extract_strided_slice %7 {offsets = [0, 48], sizes = [16, 8], strides = [1, 1]} : vector<16x64xf32> to vector<16x8xf32>
    %150 = vector.shape_cast %149 : vector<16x8xf32> to vector<2x8x8xf32>
    %151 = vector.extract_strided_slice %14 {offsets = [0, 48], sizes = [16, 8], strides = [1, 1]} : vector<16x64xf32> to vector<16x8xf32>
    %152 = vector.shape_cast %151 : vector<16x8xf32> to vector<2x8x8xf32>
    %153 = vector.extract_strided_slice %15 {offsets = [0, 48], sizes = [16, 8], strides = [1, 1]} : vector<16x64xf32> to vector<16x8xf32>
    %154 = vector.shape_cast %153 : vector<16x8xf32> to vector<2x8x8xf32>
    "tpu.trace_start"() <{level = 10 : i32, message = "bqd,bkd->bqk"}> : () -> ()
    %cst_45 = arith.constant dense<0.000000e+00> : vector<2x8x8xf32>
    %155 = tpu.matmul %150, %152, %cst_45 {dimension_numbers = #tpu.dot_dimension_numbers<[2], [2], [1], [1], [0, 0, 0, 1, 1, 1], [0], [0]>} : vector<2x8x8xf32>, vector<2x8x8xf32>, vector<2x8x8xf32> -> vector<2x8x8xf32>
    "tpu.trace_stop"() : () -> ()
    %cst_46 = arith.constant 0.353553385 : f32
    %156 = vector.broadcast %cst_46 : f32 to vector<2x8x8xf32>
    %157 = arith.mulf %155, %156 : vector<2x8x8xf32>
    %158 = arith.addf %157, %16 : vector<2x8x8xf32>
    %cst_47 = arith.constant dense<0xFF800000> : vector<2x8xf32>
    %159 = vector.multi_reduction <maximumf>, %158, %cst_47 [2] : vector<2x8x8xf32> to vector<2x8xf32>
    %160 = vector.shape_cast %159 : vector<2x8xf32> to vector<2x8x1xf32>
    %161 = vector.broadcast %160 : vector<2x8x1xf32> to vector<2x8x8xf32>
    %162 = arith.subf %158, %161 : vector<2x8x8xf32>
    %163 = math.exp %162 : vector<2x8x8xf32>
    %cst_48 = arith.constant dense<0.000000e+00> : vector<2x8xf32>
    %164 = vector.multi_reduction <add>, %163, %cst_48 [2] : vector<2x8x8xf32> to vector<2x8xf32>
    %165 = vector.shape_cast %164 : vector<2x8xf32> to vector<2x8x1xf32>
    %166 = tpu.reciprocal %165 {approx = true} : vector<2x8x1xf32> -> vector<2x8x1xf32>
    %167 = vector.broadcast %166 : vector<2x8x1xf32> to vector<2x8x8xf32>
    %168 = arith.mulf %163, %167 : vector<2x8x8xf32>
    "tpu.trace_start"() <{level = 10 : i32, message = "bqk,bkd->bqd"}> : () -> ()
    %cst_49 = arith.constant dense<0.000000e+00> : vector<2x8x8xf32>
    %169 = tpu.matmul %168, %154, %cst_49 {dimension_numbers = #tpu.dot_dimension_numbers<[2], [1], [1], [2], [0, 0, 0, 1, 1, 2], [0], [0]>} : vector<2x8x8xf32>, vector<2x8x8xf32>, vector<2x8x8xf32> -> vector<2x8x8xf32>
    "tpu.trace_stop"() : () -> ()
    %170 = vector.shape_cast %169 : vector<2x8x8xf32> to vector<16x8xf32>
    %171 = vector.extract_strided_slice %7 {offsets = [0, 56], sizes = [16, 8], strides = [1, 1]} : vector<16x64xf32> to vector<16x8xf32>
    %172 = vector.shape_cast %171 : vector<16x8xf32> to vector<2x8x8xf32>
    %173 = vector.extract_strided_slice %14 {offsets = [0, 56], sizes = [16, 8], strides = [1, 1]} : vector<16x64xf32> to vector<16x8xf32>
    %174 = vector.shape_cast %173 : vector<16x8xf32> to vector<2x8x8xf32>
    %175 = vector.extract_strided_slice %15 {offsets = [0, 56], sizes = [16, 8], strides = [1, 1]} : vector<16x64xf32> to vector<16x8xf32>
    %176 = vector.shape_cast %175 : vector<16x8xf32> to vector<2x8x8xf32>
    "tpu.trace_start"() <{level = 10 : i32, message = "bqd,bkd->bqk"}> : () -> ()
    %cst_50 = arith.constant dense<0.000000e+00> : vector<2x8x8xf32>
    %177 = tpu.matmul %172, %174, %cst_50 {dimension_numbers = #tpu.dot_dimension_numbers<[2], [2], [1], [1], [0, 0, 0, 1, 1, 1], [0], [0]>} : vector<2x8x8xf32>, vector<2x8x8xf32>, vector<2x8x8xf32> -> vector<2x8x8xf32>
    "tpu.trace_stop"() : () -> ()
    %cst_51 = arith.constant 0.353553385 : f32
    %178 = vector.broadcast %cst_51 : f32 to vector<2x8x8xf32>
    %179 = arith.mulf %177, %178 : vector<2x8x8xf32>
    %180 = arith.addf %179, %16 : vector<2x8x8xf32>
    %cst_52 = arith.constant dense<0xFF800000> : vector<2x8xf32>
    %181 = vector.multi_reduction <maximumf>, %180, %cst_52 [2] : vector<2x8x8xf32> to vector<2x8xf32>
    %182 = vector.shape_cast %181 : vector<2x8xf32> to vector<2x8x1xf32>
    %183 = vector.broadcast %182 : vector<2x8x1xf32> to vector<2x8x8xf32>
    %184 = arith.subf %180, %183 : vector<2x8x8xf32>
    %185 = math.exp %184 : vector<2x8x8xf32>
    %cst_53 = arith.constant dense<0.000000e+00> : vector<2x8xf32>
    %186 = vector.multi_reduction <add>, %185, %cst_53 [2] : vector<2x8x8xf32> to vector<2x8xf32>
    %187 = vector.shape_cast %186 : vector<2x8xf32> to vector<2x8x1xf32>
    %188 = tpu.reciprocal %187 {approx = true} : vector<2x8x1xf32> -> vector<2x8x1xf32>
    %189 = vector.broadcast %188 : vector<2x8x1xf32> to vector<2x8x8xf32>
    %190 = arith.mulf %185, %189 : vector<2x8x8xf32>
    "tpu.trace_start"() <{level = 10 : i32, message = "bqk,bkd->bqd"}> : () -> ()
    %cst_54 = arith.constant dense<0.000000e+00> : vector<2x8x8xf32>
    %191 = tpu.matmul %190, %176, %cst_54 {dimension_numbers = #tpu.dot_dimension_numbers<[2], [1], [1], [2], [0, 0, 0, 1, 1, 2], [0], [0]>} : vector<2x8x8xf32>, vector<2x8x8xf32>, vector<2x8x8xf32> -> vector<2x8x8xf32>
    "tpu.trace_stop"() : () -> ()
    %192 = vector.shape_cast %191 : vector<2x8x8xf32> to vector<16x8xf32>
    %193 = tpu.concatenate %38, %60, %82, %104, %126, %148, %170, %192 in 1 : vector<16x8xf32>, vector<16x8xf32>, vector<16x8xf32>, vector<16x8xf32>, vector<16x8xf32>, vector<16x8xf32>, vector<16x8xf32>, vector<16x8xf32> -> vector<16x64xf32>
    %194 = arith.truncf %193 : vector<16x64xf32> to vector<16x64xbf16>
    %c0_55 = arith.constant 0 : index
    %c0_56 = arith.constant 0 : index
    %195 = vector.load %arg7[%c0_55, %c0_56] : memref<64x64xbf16, #tpu.memory_space<vmem>>, vector<64x64xbf16>
    %cst_57 = arith.constant dense<0.000000e+00> : vector<16x64xf32>
    %196 = tpu.matmul %194, %195, %cst_57 {dimension_numbers = #tpu.dot_dimension_numbers<[1], [0], [0], [1], [0, 0, 1, 1], [], []>} : vector<16x64xbf16>, vector<64x64xbf16>, vector<16x64xf32> -> vector<16x64xf32>
    %c0_58 = arith.constant 0 : index
    %c0_59 = arith.constant 0 : index
    %197 = vector.load %arg8[%c0_58, %c0_59] : memref<1x64xf32, #tpu.memory_space<vmem>>, vector<1x64xf32>
    %198 = vector.broadcast %197 : vector<1x64xf32> to vector<16x64xf32>
    %199 = arith.addf %196, %198 : vector<16x64xf32>
    %200 = arith.addf %0, %199 : vector<16x64xf32>
    %cst_60 = arith.constant dense<0.000000e+00> : vector<16xf32>
    %201 = vector.multi_reduction <add>, %200, %cst_60 [1] : vector<16x64xf32> to vector<16xf32>
    %202 = vector.shape_cast %201 : vector<16xf32> to vector<16x1xf32>
    %cst_61 = arith.constant 6.400000e+01 : f32
    %203 = vector.broadcast %cst_61 : f32 to vector<16x1xf32>
    %204 = arith.divf %202, %203 : vector<16x1xf32>
    %205 = vector.broadcast %204 : vector<16x1xf32> to vector<16x64xf32>
    %206 = arith.subf %200, %205 : vector<16x64xf32>
    %207 = arith.mulf %206, %206 : vector<16x64xf32>
    %cst_62 = arith.constant dense<0.000000e+00> : vector<16xf32>
    %208 = vector.multi_reduction <add>, %207, %cst_62 [1] : vector<16x64xf32> to vector<16xf32>
    %209 = vector.shape_cast %208 : vector<16xf32> to vector<16x1xf32>
    %cst_63 = arith.constant 6.400000e+01 : f32
    %210 = vector.broadcast %cst_63 : f32 to vector<16x1xf32>
    %211 = arith.divf %209, %210 : vector<16x1xf32>
    %212 = vector.broadcast %204 : vector<16x1xf32> to vector<16x64xf32>
    %213 = arith.subf %200, %212 : vector<16x64xf32>
    %cst_64 = arith.constant 9.99999974E-6 : f32
    %214 = vector.broadcast %cst_64 : f32 to vector<16x1xf32>
    %215 = arith.addf %211, %214 : vector<16x1xf32>
    %216 = math.rsqrt %215 : vector<16x1xf32>
    %217 = vector.broadcast %216 : vector<16x1xf32> to vector<16x64xf32>
    %218 = arith.mulf %213, %217 : vector<16x64xf32>
    %c0_65 = arith.constant 0 : index
    %c0_66 = arith.constant 0 : index
    %219 = vector.load %arg9[%c0_65, %c0_66] : memref<1x64xf32, #tpu.memory_space<vmem>>, vector<1x64xf32>
    %220 = vector.broadcast %219 : vector<1x64xf32> to vector<16x64xf32>
    %221 = arith.mulf %218, %220 : vector<16x64xf32>
    %c0_67 = arith.constant 0 : index
    %c0_68 = arith.constant 0 : index
    %222 = vector.load %arg10[%c0_67, %c0_68] : memref<1x64xf32, #tpu.memory_space<vmem>>, vector<1x64xf32>
    %223 = vector.broadcast %222 : vector<1x64xf32> to vector<16x64xf32>
    %224 = arith.addf %221, %223 : vector<16x64xf32>
    %c0_69 = arith.constant 0 : index
    %c0_70 = arith.constant 0 : index
    %225 = vector.load %arg11[%c0_69, %c0_70] : memref<16x64xf32, #tpu.memory_space<vmem>>, vector<16x64xf32>
    tpu.vector_store %arg11[%c0_69, %c0_70], %224 {strides = array<i32>} : memref<16x64xf32, #tpu.memory_space<vmem>>, vector<16x64xf32>,
    return
  }
}

module attributes {stable_mosaic.version = 11 : i64} {
  func.func @_linear_kernel(%arg0: memref<16x64xf32, #tpu.memory_space<vmem>>, %arg1: memref<64x88xbf16, #tpu.memory_space<vmem>>, %arg2: memref<1x88xf32, #tpu.memory_space<vmem>>, %arg3: memref<16x88xf32, #tpu.memory_space<vmem>>) attributes {dimension_semantics = [], scalar_prefetch = 0 : i64, scratch_operands = 0 : i64, tpu.core_type = #tpu.core_type<tc>} {
    %c0 = arith.constant 0 : index
    %c0_0 = arith.constant 0 : index
    %0 = vector.load %arg0[%c0, %c0_0] : memref<16x64xf32, #tpu.memory_space<vmem>>, vector<16x64xf32>
    %1 = arith.truncf %0 : vector<16x64xf32> to vector<16x64xbf16>
    %c0_1 = arith.constant 0 : index
    %c0_2 = arith.constant 0 : index
    %2 = vector.load %arg1[%c0_1, %c0_2] : memref<64x88xbf16, #tpu.memory_space<vmem>>, vector<64x88xbf16>
    %cst = arith.constant dense<0.000000e+00> : vector<16x88xf32>
    %3 = tpu.matmul %1, %2, %cst {dimension_numbers = #tpu.dot_dimension_numbers<[1], [0], [0], [1], [0, 0, 1, 1], [], []>} : vector<16x64xbf16>, vector<64x88xbf16>, vector<16x88xf32> -> vector<16x88xf32>
    %c0_3 = arith.constant 0 : index
    %c0_4 = arith.constant 0 : index
    %4 = vector.load %arg2[%c0_3, %c0_4] : memref<1x88xf32, #tpu.memory_space<vmem>>, vector<1x88xf32>
    %5 = vector.broadcast %4 : vector<1x88xf32> to vector<16x88xf32>
    %6 = arith.addf %3, %5 : vector<16x88xf32>
    %c0_5 = arith.constant 0 : index
    %c0_6 = arith.constant 0 : index
    %7 = vector.load %arg3[%c0_5, %c0_6] : memref<16x88xf32, #tpu.memory_space<vmem>>, vector<16x88xf32>
    tpu.vector_store %arg3[%c0_5, %c0_6], %6 {strides = array<i32>} : memref<16x88xf32, #tpu.memory_space<vmem>>, vector<16x88xf32>,
    return
  }
}

</mosaic_0001>

<bundles_post_ra>
// kernel: transformer_forward.13
= control target key start
LH: loop header
LB: loop body
LE: loop exit
PB: predicated region body
PF: predicated region fallthrough
CT: control target
= control target key end

     0   :  { %vm18_vm0 = vcmask 523264   ;;  %s55_s0 = inlined_call_operand.vmem [shape: f32[2,8,64], index: 0, kind: input, shape index: {}]   ;;  %s56_s1 = inlined_call_operand.vmem [shape: f32[8,64], index: 1, kind: input, shape index: {}]   ;;  %s57_s2 = inlined_call_operand.vmem [shape: f32[2,8,64], index: 2, kind: output, shape index: {}]  }
   0x1   :  { %v11_v0 = vld [vmem:[%s55_s0] sm:$0xff]  ;;  %v12_v2 = vld [vmem:[%s55_s0 + $0x8] sm:$0xff] }
   0x2   :  { %v15_v1 = vld [vmem:[%s56_s1] sm:$0xff]  ;;  %v13_v3 = vmul.f32 8.0, %v11_v0  ;;  %v14_v4 = vmul.f32 8.0, %v12_v2 }
   0x4   :  { %v16_v5 = vadd.f32 %v15_v1, %v13_v3  ;;  %v17_v6 = vadd.f32 %v15_v1, %v14_v4 }
   0x6   :  { %19 = vst.msk [vmem:[%s57_s2] sm:$0xff] %vm18_vm0, %v16_v5  ;;  %20 = vst.msk [vmem:[%s57_s2 + $0x8] sm:$0xff] %vm18_vm0, %v17_v6 }

// kernel: transformer_forward.25
= control target key start
LH: loop header
LB: loop body
LE: loop exit
PB: predicated region body
PF: predicated region fallthrough
CT: control target
= control target key end

     0   :  { %v138_v0 = vmov 0.0   ;;  %vm139_vm0 = vmmov 0   ;;  %vm57_vm1 = vcmask 523264   ;;  %vm102_vm2 = vcmask 719872   ;;  %s187_s1 = inlined_call_operand.vmem [shape: bf16[64,88], index: 1, kind: input, shape index: {}]   ;;  %s188_s0 = inlined_call_operand.vmem [shape: f32[16,64], index: 0, kind: input, shape index: {}]   ;;  %s189_s2 = inlined_call_operand.vmem [shape: f32[1,88], index: 2, kind: input, shape index: {}]   ;;  %s190_s3 = inlined_call_operand.vmem [shape: f32[16,88], index: 3, kind: output, shape index: {}]  }
   0x1   :  { %120 = vmatprep.subr.bf16.mxu0 %v138_v0  ;;  %v134_v1 = vld [vmem:[%s187_s1] sm:$0xff]   ;;  %128 = vmatprep.mubr.msk.bf16.mxu0 %vm139_vm0, %v138_v0  ;;  %v135_v2 = vld [vmem:[%s187_s1 + $0x8] sm:$0xff]   ;;  %v136_v3 = vld [vmem:[%s187_s1 + $0x10] sm:$0xff]  }
   0x2   :  { %121 = vmatpush3.bf16.msra.mxu0 %v134_v1  ;;  %v137_v4 = vld [vmem:[%s187_s1 + $0x18] sm:$0xff]   ;;  %v15_v5 = vld [vmem:[%s188_s0] sm:$0xff]  ;;  %v16_v6 = vld [vmem:[%s188_s0 + $0x8] sm:$0xff] }
   0x3   :  { %122 = vmatprep.subr.bf16.mxu0 %v138_v0  ;;  %v17_v7 = vpack.c.bf16 %v16_v6, %v15_v5  ;;  %v109_v8 = vld [vmem:[%s189_s2] ss:$0 sm:$0xff] }
   0x6   :  { %123 = vmatpush3.bf16.msra.mxu0 %v135_v2 }
   0x7   :  { %124 = vmatprep.subr.bf16.mxu0 %v138_v0 }
   0xa   :  { %125 = vmatpush3.bf16.msra.mxu0 %v136_v3 }
   0xb   :  { %126 = vmatprep.subr.bf16.mxu0 %v138_v0 }
   0xe   :  { %127 = vmatpush3.bf16.msra.mxu0 %v137_v4 }
  0x11   :  { %129 = vmatmul.mubr.msk.bf16.vlgmr.msra.gmra.mrb[0].mxu0 %vm57_vm1, %v17_v7 }
  0xe4   :  { %v95_v9 = vpop.f32.mrb[0].mxu0 }
  0xe5   :  { %v96_v10 = vadd.f32 %v109_v8, %v95_v9  ;;  %v130_v11 = vpop.f32.mrb[1].mxu0 }
  0xe6   :  { %v98_v12 = vpop.f32.mrb[2].mxu0 }
  0xe7   :  { %103 = vst.msk [vmem:[%s190_s3] sm:$0xff] %vm102_vm2, %v96_v10  ;;  %v99_v13 = vadd.f32 %v109_v8, %v98_v12  ;;  %v131_v14 = vpop.f32.mrb[3].mxu0 }
  0xe9   :  { %104 = vst.msk [vmem:[%s190_s3 + $0x8] sm:$0xff] %vm102_vm2, %v99_v13 }

// kernel: transformer_forward.16
= control target key start
LH: loop header
LB: loop body
LE: loop exit
PB: predicated region body
PF: predicated region fallthrough
CT: control target
= control target key end

     0   :  { %v363_v0 = vmov 0.0   ;;  %vm364_vm0 = vmmov 0   ;;  %vm69_vm1 = vcmask 523264   ;;  %s472_s1 = inlined_call_operand.vmem [shape: bf16[64,128], index: 1, kind: input, shape index: {}]   ;;  %s473_s3 = inlined_call_operand.vmem [shape: bf16[128,64], index: 3, kind: input, shape index: {}]   ;;  %s474_s0 = inlined_call_operand.vmem [shape: f32[16,64], index: 0, kind: input, shape index: {}]   ;;  %s475_s2 = inlined_call_operand.vmem [shape: f32[1,128], index: 2, kind: input, shape index: {}]   ;;  %s476_s4 = inlined_call_operand.vmem [shape: f32[1,64], index: 4, kind: input, shape index: {}]   ;;  %s477_s5 = inlined_call_operand.vmem [shape: f32[1,64], index: 5, kind: input, shape index: {}]   ;;  %s478_s6 = inlined_call_operand.vmem [shape: f32[1,64], index: 6, kind: input, shape index: {}]   ;;  %s479_s7 = inlined_call_operand.vmem [shape: f32[16,64], index: 7, kind: output, shape index: {}]  }
   0x1   :  { %313 = vmatprep.subr.bf16.mxu0 %v363_v0  ;;  %v347_v1 = vld [vmem:[%s472_s1] sm:$0xff]   ;;  %321 = vmatprep.mubr.msk.bf16.mxu0 %vm364_vm0, %v363_v0  ;;  %v348_v2 = vld [vmem:[%s472_s1 + $0x8] sm:$0xff]   ;;  %v349_v4 = vld [vmem:[%s472_s1 + $0x10] sm:$0xff]  }
   0x2   :  { %325 = vmatprep.subr.bf16.mxu1 %v363_v0  ;;  %341 = vmatprep.mubr.msk.bf16.mxu1 %vm364_vm0, %v363_v0  ;;  %v351_v3 = vld [vmem:[%s473_s3] sm:$0xff]   ;;  %v352_v5 = vld [vmem:[%s473_s3 + $0x8] sm:$0xff]   ;;  %v350_v6 = vld [vmem:[%s472_s1 + $0x18] sm:$0xff]  }
   0x3   :  { %314 = vmatpush3.bf16.msra.mxu0 %v347_v1  ;;  %326 = vmatpush3.bf16.msra.mxu1 %v351_v3  ;;  %v27_v7 = vld [vmem:[%s474_s0] sm:$0xff]  ;;  %v28_v8 = vld [vmem:[%s474_s0 + $0x8] sm:$0xff]  ;;  %v353_v9 = vld [vmem:[%s473_s3 + $0x10] sm:$0xff]  }
   0x4   :  { %315 = vmatprep.subr.bf16.mxu0 %v363_v0  ;;  %327 = vmatprep.subr.bf16.mxu1 %v363_v0  ;;  %v29_v10 = vpack.c.bf16 %v28_v8, %v27_v7  ;;  %v354_v11 = vld [vmem:[%s473_s3 + $0x18] sm:$0xff]   ;;  %v355_v12 = vld [vmem:[%s473_s3 + $0x20] sm:$0xff]   ;;  %v356_v13 = vld [vmem:[%s473_s3 + $0x28] sm:$0xff]  }
   0x5   :  { %v357_v14 = vld [vmem:[%s473_s3 + $0x30] sm:$0xff]   ;;  %v358_v15 = vld [vmem:[%s473_s3 + $0x38] sm:$0xff]   ;;  %v282_v16 = vld [vmem:[%s475_s2] ss:$0 sm:$0xff] }
   0x6   :  { %v288_v26 = vld [vmem:[%s476_s4] ss:$0 sm:$0xff] }
   0x7   :  { %316 = vmatpush3.bf16.msra.mxu0 %v348_v2  ;;  %328 = vmatpush3.bf16.msra.mxu1 %v352_v5  ;;  %v297_v54 = vld [vmem:[%s477_s5] ss:$0 sm:$0xff] }
   0x8   :  { %317 = vmatprep.subr.bf16.mxu0 %v363_v0  ;;  %329 = vmatprep.subr.bf16.mxu1 %v363_v0  ;;  %v298_v56 = vld [vmem:[%s478_s6] ss:$0 sm:$0xff] }
   0xb   :  { %318 = vmatpush3.bf16.msra.mxu0 %v349_v4  ;;  %330 = vmatpush3.bf16.msra.mxu1 %v353_v9 }
   0xc   :  { %319 = vmatprep.subr.bf16.mxu0 %v363_v0  ;;  %331 = vmatprep.subr.bf16.mxu1 %v363_v0 }
   0xf   :  { %320 = vmatpush3.bf16.msra.mxu0 %v350_v6  ;;  %332 = vmatpush3.bf16.msra.mxu1 %v354_v11 }
  0x10   :  { %333 = vmatprep.subr.bf16.mxu1 %v363_v0 }
  0x12   :  { %322 = vmatmul.mubr.msk.bf16.vlgmr.msra.gmra.mrb[0].mxu0 %vm69_vm1, %v29_v10 }
  0x13   :  { %334 = vmatpush3.bf16.msra.mxu1 %v355_v12 }
  0x14   :  { %335 = vmatprep.subr.bf16.mxu1 %v363_v0 }
  0x17   :  { %336 = vmatpush3.bf16.msra.mxu1 %v356_v13 }
  0x18   :  { %337 = vmatprep.subr.bf16.mxu1 %v363_v0 }
  0x1b   :  { %338 = vmatpush3.bf16.msra.mxu1 %v357_v14 }
  0x1c   :  { %339 = vmatprep.subr.bf16.mxu1 %v363_v0 }
  0x1f   :  { %340 = vmatpush3.bf16.msra.mxu1 %v358_v15 }
  0xe5   :  { %v107_v17 = vpop.f32.mrb[0].mxu0 }
  0xe6   :  { %v108_v18 = vadd.f32 %v282_v16, %v107_v17  ;;  %v323_v19 = vpop.f32.mrb[1].mxu0 }
  0xe7   :  { %v110_v20 = vpop.f32.mrb[2].mxu0 }
  0xe8   :  { %v111_v21 = vadd.f32 %v282_v16, %v110_v20  ;;  %v324_v22 = vpop.f32.mrb[3].mxu0  ;;  %v114_v23 = vmax.f32 %v108_v18, 0.0 }
  0xea   :  { %v115_v24 = vmax.f32 %v111_v21, 0.0 }
  0xec   :  { %v116_v25 = vpack.c.bf16 %v115_v24, %v114_v23 }
  0xee   :  { %342 = vmatmul.mubr.bf16.vlgmr.msra.gmra.mrb[0].mxu1 %v116_v25 }
 0x1c1   :  { %v222_v27 = vpop.f32.mrb[0].mxu1 }
 0x1c2   :  { %v223_v28 = vadd.f32 %v288_v26, %v222_v27  ;;  %v343_v29 = vpop.f32.mrb[1].mxu1 }
 0x1c3   :  { %v225_v30 = vpop.f32.mrb[2].mxu1 }
 0x1c4   :  { %v226_v31 = vadd.f32 %v288_v26, %v225_v30  ;;  %v344_v32 = vpop.f32.mrb[3].mxu1  ;;  %v229_v33 = vadd.f32 %v223_v28, %v27_v7 }
 0x1c6   :  { %v231_v34 = vsel %vm69_vm1, %v229_v33, 0.0  ;;  %v230_v35 = vadd.f32 %v226_v31, %v28_v8 }
 0x1c7   :  { %232 = vadd.xlane.f32.xlu0 %v231_v34 }
 0x1c8   :  { %v234_v36 = vsel %vm69_vm1, %v230_v35, 0.0 }
 0x1cb   :  { %235 = vadd.xlane.f32.xlu0 %v234_v36 }
 0x254   :  { %v233_v37 = vpop.xlane.xlu0 %232 }
 0x255   :  { %v238_v38 = vmul.f32 0.015625, %v233_v37 }
 0x257   :  { %v240_v39 = vsub.f32 %v229_v33, %v238_v38 }
 0x258   :  { %v236_v40 = vpop.xlane.xlu0 %235 }
 0x259   :  { %v239_v41 = vmul.f32 0.015625, %v236_v40  ;;  %v242_v42 = vmul.f32 %v240_v39, %v240_v39 }
 0x25b   :  { %v241_v43 = vsub.f32 %v230_v35, %v239_v41  ;;  %v244_v44 = vsel %vm69_vm1, %v242_v42, 0.0 }
 0x25c   :  { %245 = vadd.xlane.f32.xlu1 %v244_v44 }
 0x25d   :  { %v243_v45 = vmul.f32 %v241_v43, %v241_v43 }
 0x25f   :  { %v247_v46 = vsel %vm69_vm1, %v243_v45, 0.0 }
 0x260   :  { %248 = vadd.xlane.f32.xlu1 %v247_v46 }
 0x2e9   :  { %v246_v47 = vpop.xlane.xlu1 %245 }
 0x2ea   :  { %v250_v48 = vmul.f32 0.015625, %v246_v47 }
 0x2ec   :  { %v252_v49 = vadd.f32 1e-05, %v250_v48 }
 0x2ed   :  { %v249_v50 = vpop.xlane.xlu1 %248 }
 0x2ee   :  { %359 = vrsqrt.f32 %v252_v49  ;;  %v251_v51 = vmul.f32 0.015625, %v249_v50 }
 0x2f0   :  { %v253_v52 = vadd.f32 1e-05, %v251_v51 }
 0x2f2   :  { %361 = vrsqrt.f32 %v253_v52 }
 0x2f8   :  { %v360_v53 = vpop.eup %359 }
 0x2f9   :  { %v256_v55 = vmul.f32 %v360_v53, %v240_v39 }
 0x2fb   :  { %v265_v57 = vmul.f32 %v297_v54, %v256_v55 }
 0x2fc   :  { %v362_v58 = vpop.eup %361 }
 0x2fd   :  { %v274_v59 = vadd.f32 %v298_v56, %v265_v57  ;;  %v257_v60 = vmul.f32 %v362_v58, %v241_v43 }
 0x2ff   :  { %276 = vst.msk [vmem:[%s479_s7] sm:$0xff] %vm69_vm1, %v274_v59  ;;  %v266_v61 = vmul.f32 %v297_v54, %v257_v60 }
 0x301   :  { %v275_v62 = vadd.f32 %v298_v56, %v266_v61 }
 0x303   :  { %277 = vst.msk [vmem:[%s479_s7 + $0x8] sm:$0xff] %vm69_vm1, %v275_v62 }

// kernel: transformer_forward.15
= control target key start
LH: loop header
LB: loop body
LE: loop exit
PB: predicated region body
PF: predicated region fallthrough
CT: control target
= control target key end

     0   :  { %v3573_v0 = vmov 0.0   ;;  %vm3574_vm0 = vmmov 0   ;;  %vm83_vm1 = vcmask 523264   ;;  %vm214_vm2 = vcmask 64512   ;;  %s3578_s27 = smov 112   ;;  %s3579_s28 = smov 48   ;;  %s4110_s3 = inlined_call_operand.vmem [shape: bf16[64,64], index: 3, kind: input, shape index: {}]   ;;  %s4111_s5 = inlined_call_operand.vmem [shape: bf16[64,128], index: 5, kind: input, shape index: {}]   ;;  %s4112_s0 = inlined_call_operand.vmem [shape: f32[16,64], index: 0, kind: input, shape index: {}, may-alias: {0,1}]   ;;  %s4113_s1 = inlined_call_operand.vmem [shape: f32[16,64], index: 1, kind: input, shape index: {}, may-alias: {0,1}]   ;;  %s4114_s6 = inlined_call_operand.vmem [shape: f32[1,128], index: 6, kind: input, shape index: {}]   ;;  %s4115_s4 = inlined_call_operand.vmem [shape: f32[1,64], index: 4, kind: input, shape index: {}]   ;;  %s4116_s2 = inlined_call_operand.vmem [shape: f32[2,8,8], index: 2, kind: input, shape index: {}]   ;;  %s4117_s7 = inlined_call_operand.vmem [shape: bf16[64,64], index: 7, kind: input, shape index: {}]   ;;  %s4118_s8 = inlined_call_operand.vmem [shape: f32[1,64], index: 8, kind: input, shape index: {}]   ;;  %s4119_s9 = inlined_call_operand.vmem [shape: f32[1,64], index: 9, kind: input, shape index: {}]   ;;  %s4120_s10 = inlined_call_operand.vmem [shape: f32[1,64], index: 10, kind: input, shape index: {}]   ;;  %s4121_s11 = inlined_call_operand.vmem [shape: f32[16,64], index: 11, kind: output, shape index: {}]  }
   0x1   :  { %3243 = vmatprep.subr.bf16.mxu1 %v3573_v0  ;;  %v3491_v1 = vld [vmem:[%s4110_s3] sm:$0xff]   ;;  %3251 = vmatprep.mubr.msk.bf16.mxu1 %vm3574_vm0, %v3573_v0  ;;  %v3492_v2 = vld [vmem:[%s4110_s3 + $0x8] sm:$0xff]   ;;  %v3493_v3 = vld [vmem:[%s4110_s3 + $0x10] sm:$0xff]   ;;  %s3580_s29 = smov 104   ;;  %s3581_s30 = smov 40   ;;  %vm2941_vm3 = vcmask 130048  }
   0x2   :  { %3267 = vmatprep.subr.mxu0 %v3573_v0  ;;  %3269 = vmatprep.mubr.msk.f32.mxu0 %vm3574_vm0, %v3573_v0  ;;  %v3494_v4 = vld [vmem:[%s4110_s3 + $0x18] sm:$0xff]   ;;  %v39_v5 = vld [vmem:[%s4112_s0] sm:$0xff]  ;;  %v40_v6 = vld [vmem:[%s4112_s0 + $0x8] sm:$0xff]  ;;  %s3582_s3 = smov 96   ;;  %s3583_s12 = smov 32   ;;  %vm2944_vm4 = vcmask 195584  }
   0x3   :  { %3244 = vmatpush3.bf16.msra.mxu1 %v3491_v1  ;;  %v43_v7 = vpack.c.bf16 %v40_v6, %v39_v5  ;;  %v3495_v8 = vld [vmem:[%s4111_s5] sm:$0xff]   ;;  %v3496_v9 = vld [vmem:[%s4111_s5 + $0x8] sm:$0xff]   ;;  %v3497_v10 = vld [vmem:[%s4111_s5 + $0x10] sm:$0xff]   ;;  %s3584_s13 = smov 88   ;;  %s3585_s14 = smov 24   ;;  %vm2947_vm5 = vcmask 261120  }
   0x4   :  { %3245 = vmatprep.subr.bf16.mxu1 %v3573_v0  ;;  %v3498_v11 = vld [vmem:[%s4111_s5 + $0x18] sm:$0xff]   ;;  %v41_v12 = vld [vmem:[%s4113_s1] sm:$0xff]  ;;  %v42_v13 = vld [vmem:[%s4113_s1 + $0x8] sm:$0xff]  ;;  %s3586_s15 = smov 80   ;;  %s3587_s16 = smov 16   ;;  %vm2950_vm6 = vcmask 326656  }
   0x5   :  { %v128_v14 = vpack.c.bf16 %v42_v13, %v41_v12  ;;  %v3102_v19 = vld [vmem:[%s4114_s6] ss:$0 sm:$0xff]  ;;  %s3575_s6 = smov 64   ;;  %v3751_v38 = vld [vmem:[%s4116_s2 + $0x8] sm:$0xff]  ;;  %s3588_s17 = smov 72   ;;  %vm2953_vm7 = vcmask 392192  }
   0x6   :  { %v3096_v21 = vld [vmem:[%s4115_s4] ss:$0 sm:$0xff]  ;;  %s3576_s4 = smov 120   ;;  %s3589_s18 = smov 8   ;;  %vm2956_vm8 = vcmask 457728  }
   0x7   :  { %3246 = vmatpush3.bf16.msra.mxu1 %v3492_v2  ;;  %v3745_v33 = vld [vmem:[%s4116_s2] sm:$0xff]  ;;  %s3577_s2 = smov 56  }
   0x8   :  { %3247 = vmatprep.subr.bf16.mxu1 %v3573_v0 }
   0xb   :  { %3248 = vmatpush3.bf16.msra.mxu1 %v3493_v3 }
   0xc   :  { %3249 = vmatprep.subr.bf16.mxu1 %v3573_v0 }
   0xf   :  { %3250 = vmatpush3.bf16.msra.mxu1 %v3494_v4 }
  0x10   :  { %3255 = vmatprep.subr.bf16.mxu1 %v3573_v0 }
  0x12   :  { %3252 = vmatmul.mubr.msk.bf16.vlgmr.msra.gmra.mrb[0].mxu1 %vm83_vm1, %v43_v7 }
  0x13   :  { %3256 = vmatpush3.bf16.msra.mxu1 %v3495_v8  ;;  %3263 = vmatprep.mubr.msk.bf16.mxu1 %vm3574_vm0, %v3573_v0 }
  0x14   :  { %3257 = vmatprep.subr.bf16.mxu1 %v3573_v0 }
  0x17   :  { %3258 = vmatpush3.bf16.msra.mxu1 %v3496_v9 }
  0x18   :  { %3259 = vmatprep.subr.bf16.mxu1 %v3573_v0 }
  0x1b   :  { %3260 = vmatpush3.bf16.msra.mxu1 %v3497_v10 }
  0x1c   :  { %3261 = vmatprep.subr.bf16.mxu1 %v3573_v0 }
  0x1f   :  { %3262 = vmatpush3.bf16.msra.mxu1 %v3498_v11 }
  0x20   :  { %3292 = vmatprep.subr.mxu1 %v3573_v0 }
  0x22   :  { %3264 = vmatmul.mubr.msk.bf16.vlgmr.msra.gmra.mrb[4].mxu1 %vm83_vm1, %v128_v14 }
  0x23   :  { %3294 = vmatprep.mubr.msk.f32.mxu1 %vm3574_vm0, %v3573_v0 }
  0xe5   :  { %v121_v15 = vpop.f32.mrb[0].mxu1 }
  0xe6   :  { %v3253_v16 = vpop.f32.mrb[1].mxu1  ;;  %v3718_v27 = vadd.f32 %v3096_v21, %v121_v15 }
  0xe7   :  { %v124_v17 = vpop.f32.mrb[2].mxu1 }
  0xe8   :  { %v3254_v18 = vpop.f32.mrb[3].mxu1  ;;  %v3729_v28 = vadd.f32 %v3096_v21, %v124_v17 }
  0xf5   :  { %v205_v20 = vpop.f32.mrb[4].mxu1 }
  0xf6   :  { %v3712_v22 = vadd.f32 %v3102_v19, %v205_v20  ;;  %v3265_v23 = vpop.f32.mrb[5].mxu1 }
  0xf7   :  { %v208_v24 = vpop.f32.mrb[6].mxu1 }
  0xf8   :  { %v3714_v25 = vadd.f32 %v3102_v19, %v208_v24  ;;  %v3266_v26 = vpop.f32.mrb[7].mxu1  ;;  %3268 = vmatpush3.xpose.msk.msra.mxu0 %vm214_vm2, %v3712_v22 }
  0xf9   :  { %3272 = vmatprep.subr.mxu0 %v3573_v0 }
  0xfa   :  { %469 = vrot.lane.b32.xlu1 %v3714_v25, %s3575_s6 }
  0xfb   :  { %3270 = vmatmul.mubr.msk.f32.vlgmr.msra.gmra.mrb[0].mxu0 %vm214_vm2, %v3718_v27 }
  0xfc   :  { %3273 = vmatpush3.xpose.msk.msra.mxu0 %vm214_vm2, %v3714_v25  ;;  %3274 = vmatprep.mubr.msk.f32.mxu0 %vm3574_vm0, %v3573_v0 }
  0xfd   :  { %3277 = vmatprep.subr.mxu0 %v3573_v0 }
  0xfe   :  { %547 = vrot.lane.b32.xlu1 %v3712_v22, %s3576_s4 }
  0xff   :  { %3275 = vmatmul.mubr.msk.f32.vlgmr.msra.gmra.mrb[2].mxu0 %vm214_vm2, %v3729_v28 }
 0x100   :  { %3279 = vmatprep.mubr.msk.f32.mxu0 %vm3574_vm0, %v3573_v0 }
 0x102   :  { %625 = vrot.lane.b32.xlu1 %v3714_v25, %s3576_s4 }
 0x16c   :  { %v470_v29 = vpop.permute.xlu1 %469 }
 0x170   :  { %v548_v30 = vpop.permute.xlu1 %547 }
 0x174   :  { %v626_v31 = vpop.permute.xlu1 %625 }
 0x175   :  { %3293 = vmatpush3.xpose.msk.msra.mxu1 %vm214_vm2, %v626_v31 }
 0x176   :  { %3302 = vmatprep.subr.mxu1 %v3573_v0 }
 0x1ce   :  { %v287_v32 = vpop.f32.mrb[0].mxu0 }
 0x1cf   :  { %v367_v34 = vmul.f32 0.35355338, %v287_v32  ;;  %v3271_v35 = vpop.f32.mrb[1].mxu0 }
 0x1d1   :  { %v369_v36 = vadd.f32 %v367_v34, %v3745_v33 }
 0x1d2   :  { %v363_v37 = vpop.f32.mrb[2].mxu0 }
 0x1d3   :  { %v368_v39 = vmul.f32 0.35355338, %v363_v37  ;;  %v3276_v40 = vpop.f32.mrb[3].mxu0  ;;  %v371_v41 = vsel %vm214_vm2, %v369_v36, -inf }
 0x1d4   :  { %372 = vmax.xlane.f32.xlu0 %v371_v41 }
 0x1d5   :  { %v370_v42 = vadd.f32 %v368_v39, %v3751_v38 }
 0x1d7   :  { %v374_v43 = vsel %vm214_vm2, %v370_v42, -inf }
 0x1d8   :  { %375 = vmax.xlane.f32.xlu0 %v374_v43 }
 0x1ee   :  { %393 = vrot.lane.b32.xlu0 %v3712_v22, %s3575_s6 }
 0x1f2   :  { %545 = vrot.lane.b32.xlu0 %v3718_v27, %s3576_s4 }
 0x261   :  { %v373_v44 = vpop.xlane.xlu0 %372 }
 0x262   :  { %v377_v45 = vsub.f32 %v369_v36, %v373_v44 }
 0x264   :  { %v379_v46 = vmul.f32 1.442695, %v377_v45 }
 0x265   :  { %v376_v47 = vpop.xlane.xlu0 %375 }
 0x266   :  { %3503 = vpow2.f32 %v379_v46  ;;  %v378_v48 = vsub.f32 %v370_v42, %v376_v47 }
 0x268   :  { %v381_v49 = vmul.f32 1.442695, %v378_v48 }
 0x269   :  { %v394_v50 = vpop.permute.xlu0 %393 }
 0x26a   :  { %3505 = vpow2.f32 %v381_v49  ;;  %3278 = vmatpush3.msra.mxu0 %v394_v50 }
 0x26b   :  { %3282 = vmatprep.subr.mxu0 %v3573_v0 }
 0x26d   :  { %v546_v62 = vpop.permute.xlu0 %545 }
 0x270   :  { %v3504_v51 = vpop.eup %3503 }
 0x271   :  { %v383_v52 = vsel %vm214_vm2, %v3504_v51, 0.0 }
 0x272   :  { %384 = vadd.xlane.f32.xlu1 %v383_v52 }
 0x274   :  { %v3506_v53 = vpop.eup %3505 }
 0x275   :  { %v386_v54 = vsel %vm214_vm2, %v3506_v53, 0.0 }
 0x276   :  { %387 = vadd.xlane.f32.xlu1 %v386_v54 }
 0x287   :  { %623 = vrot.lane.b32.xlu1 %v3729_v28, %s3576_s4 }
 0x2ff   :  { %v385_v55 = vpop.xlane.xlu1 %384 }
 0x300   :  { %3507 = vrcp.f32 %v385_v55 }
 0x303   :  { %v388_v56 = vpop.xlane.xlu1 %387 }
 0x304   :  { %3509 = vrcp.f32 %v388_v56 }
 0x307   :  { %v624_v57 = vpop.permute.xlu1 %623 }
 0x308   :  { %3295 = vmatmul.mubr.msk.f32.vlgmr.msra.gmra.mrb[8].mxu1 %vm214_vm2, %v624_v57 }
 0x309   :  { %3304 = vmatprep.mubr.msk.f32.mxu1 %vm3574_vm0, %v3573_v0 }
 0x30a   :  { %v3508_v58 = vpop.eup %3507 }
 0x30b   :  { %v391_v59 = vmul.f32 %v3508_v58, %v3504_v51 }
 0x30d   :  { %3280 = vmatmul.mubr.msk.f32.vlgmr.msra.gmra.mrb[4].mxu0 %vm214_vm2, %v391_v59 }
 0x30e   :  { %v3510_v60 = vpop.eup %3509  ;;  %3283 = vmatpush3.msra.mxu0 %v470_v29  ;;  %3284 = vmatprep.mubr.msk.f32.mxu0 %vm3574_vm0, %v3573_v0 }
 0x30f   :  { %v392_v61 = vmul.f32 %v3510_v60, %v3506_v53  ;;  %3287 = vmatprep.subr.mxu0 %v3573_v0 }
 0x311   :  { %3285 = vmatmul.mubr.msk.f32.vlgmr.msra.gmra.mrb[6].mxu0 %vm214_vm2, %v392_v61 }
 0x312   :  { %3289 = vmatprep.mubr.msk.f32.mxu0 %vm3574_vm0, %v3573_v0 }
 0x315   :  { %3288 = vmatpush3.xpose.msk.msra.mxu0 %vm214_vm2, %v548_v30 }
 0x316   :  { %3297 = vmatprep.subr.mxu0 %v3573_v0 }
 0x318   :  { %3290 = vmatmul.mubr.msk.f32.vlgmr.msra.gmra.mrb[8].mxu0 %vm214_vm2, %v546_v62 }
 0x319   :  { %3299 = vmatprep.mubr.msk.f32.mxu0 %vm3574_vm0, %v3573_v0 }
 0x3db   :  { %v697_v63 = vpop.f32.mrb[8].mxu1 }
 0x3dc   :  { %v702_v1 = vmul.f32 0.35355338, %v697_v63  ;;  %v3296_v2 = vpop.f32.mrb[9].mxu1 }
 0x3de   :  { %v704_v3 = vadd.f32 %v702_v1, %v3751_v38 }
 0x3e0   :  { %v3781_v4 = vpop.f32.mrb[4].mxu0  ;;  %v708_v5 = vsel %vm214_vm2, %v704_v3, -inf }
 0x3e1   :  { %v3281_v6 = vpop.f32.mrb[5].mxu0  ;;  %709 = vmax.xlane.f32.xlu1 %v708_v5 }
 0x3e4   :  { %v3784_v7 = vpop.f32.mrb[6].mxu0 }
 0x3e5   :  { %v3286_v8 = vpop.f32.mrb[7].mxu0 }
 0x3eb   :  { %v619_v9 = vpop.f32.mrb[8].mxu0 }
 0x3ec   :  { %v701_v10 = vmul.f32 0.35355338, %v619_v9  ;;  %v3291_v11 = vpop.f32.mrb[9].mxu0 }
 0x3ee   :  { %v703_v12 = vadd.f32 %v701_v10, %v3745_v33 }
 0x3f0   :  { %v705_v13 = vsel %vm214_vm2, %v703_v12, -inf }
 0x3f1   :  { %706 = vmax.xlane.f32.xlu0 %v705_v13 }
 0x3f2   :  { %803 = vrot.lane.b32.xlu1 %v3714_v25, %s3577_s2 }
 0x3f6   :  { %881 = vrot.lane.b32.xlu1 %v3712_v22, %s3578_s27 }
 0x3fa   :  { %959 = vrot.lane.b32.xlu1 %v3714_v25, %s3578_s27 }
 0x3fe   :  { %957 = vrot.lane.b32.xlu1 %v3729_v28, %s3578_s27 }
 0x46e   :  { %v710_v14 = vpop.xlane.xlu1 %709 }
 0x46f   :  { %v712_v15 = vsub.f32 %v704_v3, %v710_v14 }
 0x471   :  { %v715_v16 = vmul.f32 1.442695, %v712_v15 }
 0x472   :  { %v804_v17 = vpop.permute.xlu1 %803 }
 0x473   :  { %3511 = vpow2.f32 %v715_v16  ;;  %3303 = vmatpush3.msra.mxu1 %v804_v17 }
 0x474   :  { %3312 = vmatprep.subr.mxu1 %v3573_v0 }
 0x476   :  { %v882_v31 = vpop.permute.xlu1 %881 }
 0x47a   :  { %v960_v34 = vpop.permute.xlu1 %959 }
 0x47d   :  { %v3512_v18 = vpop.eup %3511 }
 0x47e   :  { %v720_v19 = vsel %vm214_vm2, %v3512_v18, 0.0  ;;  %v707_v20 = vpop.xlane.xlu0 %706  ;;  %v958_v36 = vpop.permute.xlu1 %957 }
 0x47f   :  { %721 = vadd.xlane.f32.xlu0 %v720_v19  ;;  %v711_v21 = vsub.f32 %v703_v12, %v707_v20 }
 0x481   :  { %v713_v23 = vmul.f32 1.442695, %v711_v21 }
 0x483   :  { %3513 = vpow2.f32 %v713_v23 }
 0x48d   :  { %v3514_v24 = vpop.eup %3513 }
 0x48e   :  { %v717_v26 = vsel %vm214_vm2, %v3514_v24, 0.0 }
 0x495   :  { %727 = vrot.lane.b32.xlu0 %v3712_v22, %s3577_s2 }
 0x4b4   :  { %718 = vadd.xlane.f32.xlu0 %v717_v26 }
 0x4ca   :  { %879 = vrot.lane.b32.xlu0 %v3718_v27, %s3578_s27 }
 0x50c   :  { %v722_v29 = vpop.xlane.xlu0 %721 }
 0x50d   :  { %3515 = vrcp.f32 %v722_v29 }
 0x510   :  { %v728_v30 = vpop.permute.xlu0 %727 }
 0x511   :  { %3298 = vmatpush3.msra.mxu0 %v728_v30 }
 0x512   :  { %3307 = vmatprep.subr.mxu0 %v3573_v0 }
 0x517   :  { %v3516_v32 = vpop.eup %3515 }
 0x518   :  { %v726_v35 = vmul.f32 %v3516_v32, %v3512_v18 }
 0x51a   :  { %3305 = vmatmul.mubr.msk.f32.vlgmr.msra.gmra.mrb[10].mxu1 %vm214_vm2, %v726_v35 }
 0x51b   :  { %3313 = vmatpush3.xpose.msk.msra.mxu1 %vm214_vm2, %v960_v34  ;;  %3314 = vmatprep.mubr.msk.f32.mxu1 %vm3574_vm0, %v3573_v0 }
 0x51c   :  { %3322 = vmatprep.subr.mxu1 %v3573_v0 }
 0x51e   :  { %3315 = vmatmul.mubr.msk.f32.vlgmr.msra.gmra.mrb[12].mxu1 %vm214_vm2, %v958_v36 }
 0x51f   :  { %3324 = vmatprep.mubr.msk.f32.mxu1 %vm3574_vm0, %v3573_v0 }
 0x541   :  { %v719_v37 = vpop.xlane.xlu0 %718 }
 0x542   :  { %3517 = vrcp.f32 %v719_v37 }
 0x545   :  { %v880_v41 = vpop.permute.xlu0 %879 }
 0x54c   :  { %v3518_v39 = vpop.eup %3517 }
 0x54d   :  { %v725_v40 = vmul.f32 %v3518_v39, %v3514_v24 }
 0x54f   :  { %3300 = vmatmul.mubr.msk.f32.vlgmr.msra.gmra.mrb[10].mxu0 %vm214_vm2, %v725_v40 }
 0x550   :  { %3308 = vmatpush3.xpose.msk.msra.mxu0 %vm214_vm2, %v882_v31  ;;  %3309 = vmatprep.mubr.msk.f32.mxu0 %vm3574_vm0, %v3573_v0 }
 0x551   :  { %3317 = vmatprep.subr.mxu0 %v3573_v0 }
 0x553   :  { %3310 = vmatmul.mubr.msk.f32.vlgmr.msra.gmra.mrb[12].mxu0 %vm214_vm2, %v880_v41 }
 0x554   :  { %3319 = vmatprep.mubr.msk.f32.mxu0 %vm3574_vm0, %v3573_v0 }
 0x5ed   :  { %v3816_v42 = vpop.f32.mrb[10].mxu1 }
 0x5ee   :  { %v3306_v43 = vpop.f32.mrb[11].mxu1 }
 0x5f1   :  { %v1031_v44 = vpop.f32.mrb[12].mxu1 }
 0x5f2   :  { %v1036_v45 = vmul.f32 0.35355338, %v1031_v44  ;;  %v3316_v46 = vpop.f32.mrb[13].mxu1 }
 0x5f4   :  { %v1038_v47 = vadd.f32 %v1036_v45, %v3751_v38 }
 0x5f6   :  { %v1042_v48 = vsel %vm214_vm2, %v1038_v47, -inf }
 0x5f7   :  { %1043 = vmax.xlane.f32.xlu1 %v1042_v48 }
 0x608   :  { %1137 = vrot.lane.b32.xlu1 %v3714_v25, %s3579_s28 }
 0x60c   :  { %1215 = vrot.lane.b32.xlu1 %v3712_v22, %s3580_s29 }
 0x610   :  { %1293 = vrot.lane.b32.xlu1 %v3714_v25, %s3580_s29 }
 0x614   :  { %1291 = vrot.lane.b32.xlu1 %v3729_v28, %s3580_s29 }
 0x622   :  { %v3828_v49 = vpop.f32.mrb[10].mxu0 }
 0x623   :  { %v3456_v50 = vpack.i.bf16 %v3816_v42, %v3828_v49  ;;  %v3301_v51 = vpop.f32.mrb[11].mxu0 }
 0x626   :  { %v953_v52 = vpop.f32.mrb[12].mxu0 }
 0x627   :  { %v1035_v53 = vmul.f32 0.35355338, %v953_v52  ;;  %v3311_v54 = vpop.f32.mrb[13].mxu0 }
 0x629   :  { %v1037_v55 = vadd.f32 %v1035_v53, %v3745_v33 }
 0x62b   :  { %v1039_v56 = vsel %vm214_vm2, %v1037_v55, -inf }
 0x62c   :  { %1040 = vmax.xlane.f32.xlu0 %v1039_v56 }
 0x684   :  { %v1044_v57 = vpop.xlane.xlu1 %1043 }
 0x685   :  { %v1046_v58 = vsub.f32 %v1038_v47, %v1044_v57 }
 0x687   :  { %v1049_v59 = vmul.f32 1.442695, %v1046_v58 }
 0x688   :  { %v1138_v60 = vpop.permute.xlu1 %1137 }
 0x689   :  { %3519 = vpow2.f32 %v1049_v59  ;;  %3323 = vmatpush3.msra.mxu1 %v1138_v60 }
 0x68a   :  { %3332 = vmatprep.subr.mxu1 %v3573_v0 }
 0x68c   :  { %v1216_v9 = vpop.permute.xlu1 %1215 }
 0x690   :  { %v1294_v11 = vpop.permute.xlu1 %1293 }
 0x693   :  { %v3520_v61 = vpop.eup %3519 }
 0x694   :  { %v1054_v62 = vsel %vm214_vm2, %v3520_v61, 0.0  ;;  %v1292_v13 = vpop.permute.xlu1 %1291 }
 0x695   :  { %1055 = vadd.xlane.f32.xlu0 %v1054_v62 }
 0x6ab   :  { %1061 = vrot.lane.b32.xlu0 %v3712_v22, %s3579_s28 }
 0x6b9   :  { %v1041_v63 = vpop.xlane.xlu0 %1040 }
 0x6ba   :  { %v1045_v1 = vsub.f32 %v1037_v55, %v1041_v63 }
 0x6bc   :  { %v1047_v2 = vmul.f32 1.442695, %v1045_v1 }
 0x6be   :  { %3521 = vpow2.f32 %v1047_v2 }
 0x6c8   :  { %v3522_v3 = vpop.eup %3521 }
 0x6c9   :  { %v1051_v5 = vsel %vm214_vm2, %v3522_v3, 0.0 }
 0x6ca   :  { %1052 = vadd.xlane.f32.xlu0 %v1051_v5 }
 0x6e0   :  { %1213 = vrot.lane.b32.xlu0 %v3718_v27, %s3580_s29 }
 0x722   :  { %v1056_v6 = vpop.xlane.xlu0 %1055 }
 0x723   :  { %3523 = vrcp.f32 %v1056_v6 }
 0x726   :  { %v1062_v8 = vpop.permute.xlu0 %1061 }
 0x727   :  { %3318 = vmatpush3.msra.mxu0 %v1062_v8 }
 0x728   :  { %3327 = vmatprep.subr.mxu0 %v3573_v0 }
 0x72d   :  { %v3524_v10 = vpop.eup %3523 }
 0x72e   :  { %v1060_v12 = vmul.f32 %v3524_v10, %v3520_v61 }
 0x730   :  { %3325 = vmatmul.mubr.msk.f32.vlgmr.msra.gmra.mrb[14].mxu1 %vm214_vm2, %v1060_v12 }
 0x731   :  { %3333 = vmatpush3.xpose.msk.msra.mxu1 %vm214_vm2, %v1294_v11  ;;  %3334 = vmatprep.mubr.msk.f32.mxu1 %vm3574_vm0, %v3573_v0 }
 0x732   :  { %3342 = vmatprep.subr.mxu1 %v3573_v0 }
 0x734   :  { %3335 = vmatmul.mubr.msk.f32.vlgmr.msra.gmra.mrb[16].mxu1 %vm214_vm2, %v1292_v13 }
 0x735   :  { %3344 = vmatprep.mubr.msk.f32.mxu1 %vm3574_vm0, %v3573_v0 }
 0x757   :  { %v1053_v14 = vpop.xlane.xlu0 %1052 }
 0x758   :  { %3525 = vrcp.f32 %v1053_v14 }
 0x75b   :  { %v1214_v17 = vpop.permute.xlu0 %1213 }
 0x762   :  { %v3526_v15 = vpop.eup %3525 }
 0x763   :  { %v1059_v16 = vmul.f32 %v3526_v15, %v3522_v3 }
 0x765   :  { %3320 = vmatmul.mubr.msk.f32.vlgmr.msra.gmra.mrb[14].mxu0 %vm214_vm2, %v1059_v16 }
 0x766   :  { %3328 = vmatpush3.xpose.msk.msra.mxu0 %vm214_vm2, %v1216_v9  ;;  %3329 = vmatprep.mubr.msk.f32.mxu0 %vm3574_vm0, %v3573_v0 }
 0x767   :  { %3337 = vmatprep.subr.mxu0 %v3573_v0 }
 0x769   :  { %3330 = vmatmul.mubr.msk.f32.vlgmr.msra.gmra.mrb[16].mxu0 %vm214_vm2, %v1214_v17 }
 0x76a   :  { %3339 = vmatprep.mubr.msk.f32.mxu0 %vm3574_vm0, %v3573_v0 }
 0x803   :  { %v3858_v18 = vpop.f32.mrb[14].mxu1 }
 0x804   :  { %v3326_v19 = vpop.f32.mrb[15].mxu1 }
 0x807   :  { %v1365_v20 = vpop.f32.mrb[16].mxu1 }
 0x808   :  { %v1370_v21 = vmul.f32 0.35355338, %v1365_v20  ;;  %v3336_v23 = vpop.f32.mrb[17].mxu1 }
 0x80a   :  { %v1372_v24 = vadd.f32 %v1370_v21, %v3751_v38 }
 0x80c   :  { %v1376_v26 = vsel %vm214_vm2, %v1372_v24, -inf }
 0x80d   :  { %1377 = vmax.xlane.f32.xlu1 %v1376_v26 }
 0x81e   :  { %1471 = vrot.lane.b32.xlu1 %v3714_v25, %s3581_s30 }
 0x822   :  { %1549 = vrot.lane.b32.xlu1 %v3712_v22, %s3582_s3 }
 0x826   :  { %1627 = vrot.lane.b32.xlu1 %v3714_v25, %s3582_s3 }
 0x82a   :  { %1625 = vrot.lane.b32.xlu1 %v3729_v28, %s3582_s3 }
 0x838   :  { %v3870_v29 = vpop.f32.mrb[14].mxu0 }
 0x839   :  { %v3461_v30 = vpack.i.bf16 %v3858_v18, %v3870_v29  ;;  %v3321_v31 = vpop.f32.mrb[15].mxu0 }
 0x83c   :  { %v1287_v32 = vpop.f32.mrb[16].mxu0 }
 0x83d   :  { %v1369_v34 = vmul.f32 0.35355338, %v1287_v32  ;;  %v3331_v35 = vpop.f32.mrb[17].mxu0 }
 0x83f   :  { %v1371_v36 = vadd.f32 %v1369_v34, %v3745_v33 }
 0x841   :  { %v1373_v37 = vsel %vm214_vm2, %v1371_v36, -inf }
 0x842   :  { %1374 = vmax.xlane.f32.xlu0 %v1373_v37 }
 0x89a   :  { %v1378_v39 = vpop.xlane.xlu1 %1377 }
 0x89b   :  { %v1380_v40 = vsub.f32 %v1372_v24, %v1378_v39 }
 0x89d   :  { %v1383_v41 = vmul.f32 1.442695, %v1380_v40 }
 0x89e   :  { %v1472_v43 = vpop.permute.xlu1 %1471 }
 0x89f   :  { %3527 = vpow2.f32 %v1383_v41  ;;  %3343 = vmatpush3.msra.mxu1 %v1472_v43 }
 0x8a0   :  { %3352 = vmatprep.subr.mxu1 %v3573_v0 }
 0x8a2   :  { %v1550_v55 = vpop.permute.xlu1 %1549 }
 0x8a6   :  { %v1628_v57 = vpop.permute.xlu1 %1627 }
 0x8a9   :  { %v3528_v44 = vpop.eup %3527 }
 0x8aa   :  { %v1388_v45 = vsel %vm214_vm2, %v3528_v44, 0.0  ;;  %v1626_v59 = vpop.permute.xlu1 %1625 }
 0x8ab   :  { %1389 = vadd.xlane.f32.xlu0 %v1388_v45 }
 0x8c1   :  { %1395 = vrot.lane.b32.xlu0 %v3712_v22, %s3581_s30 }
 0x8cf   :  { %v1375_v46 = vpop.xlane.xlu0 %1374 }
 0x8d0   :  { %v1379_v47 = vsub.f32 %v1371_v36, %v1375_v46 }
 0x8d2   :  { %v1381_v48 = vmul.f32 1.442695, %v1379_v47 }
 0x8d4   :  { %3529 = vpow2.f32 %v1381_v48 }
 0x8de   :  { %v3530_v51 = vpop.eup %3529 }
 0x8df   :  { %v1385_v52 = vsel %vm214_vm2, %v3530_v51, 0.0 }
 0x8e0   :  { %1386 = vadd.xlane.f32.xlu0 %v1385_v52 }
 0x8f6   :  { %1547 = vrot.lane.b32.xlu0 %v3718_v27, %s3582_s3 }
 0x938   :  { %v1390_v53 = vpop.xlane.xlu0 %1389 }
 0x939   :  { %3531 = vrcp.f32 %v1390_v53 }
 0x93c   :  { %v1396_v54 = vpop.permute.xlu0 %1395 }
 0x93d   :  { %3338 = vmatpush3.msra.mxu0 %v1396_v54 }
 0x93e   :  { %3347 = vmatprep.subr.mxu0 %v3573_v0 }
 0x943   :  { %v3532_v56 = vpop.eup %3531 }
 0x944   :  { %v1394_v58 = vmul.f32 %v3532_v56, %v3528_v44 }
 0x946   :  { %3345 = vmatmul.mubr.msk.f32.vlgmr.msra.gmra.mrb[18].mxu1 %vm214_vm2, %v1394_v58 }
 0x947   :  { %3353 = vmatpush3.xpose.msk.msra.mxu1 %vm214_vm2, %v1628_v57  ;;  %3354 = vmatprep.mubr.msk.f32.mxu1 %vm3574_vm0, %v3573_v0 }
 0x948   :  { %3362 = vmatprep.subr.mxu1 %v3573_v0 }
 0x94a   :  { %3355 = vmatmul.mubr.msk.f32.vlgmr.msra.gmra.mrb[20].mxu1 %vm214_vm2, %v1626_v59 }
 0x94b   :  { %3364 = vmatprep.mubr.msk.f32.mxu1 %vm3574_vm0, %v3573_v0 }
 0x96d   :  { %v1387_v60 = vpop.xlane.xlu0 %1386 }
 0x96e   :  { %3533 = vrcp.f32 %v1387_v60 }
 0x971   :  { %v1548_v63 = vpop.permute.xlu0 %1547 }
 0x978   :  { %v3534_v61 = vpop.eup %3533 }
 0x979   :  { %v1393_v62 = vmul.f32 %v3534_v61, %v3530_v51 }
 0x97b   :  { %3340 = vmatmul.mubr.msk.f32.vlgmr.msra.gmra.mrb[18].mxu0 %vm214_vm2, %v1393_v62 }
 0x97c   :  { %3348 = vmatpush3.xpose.msk.msra.mxu0 %vm214_vm2, %v1550_v55  ;;  %3349 = vmatprep.mubr.msk.f32.mxu0 %vm3574_vm0, %v3573_v0 }
 0x97d   :  { %3357 = vmatprep.subr.mxu0 %v3573_v0 }
 0x97f   :  { %3350 = vmatmul.mubr.msk.f32.vlgmr.msra.gmra.mrb[20].mxu0 %vm214_vm2, %v1548_v63 }
 0x980   :  { %3359 = vmatprep.mubr.msk.f32.mxu0 %vm3574_vm0, %v3573_v0 }
 0xa19   :  { %v3900_v1 = vpop.f32.mrb[18].mxu1 }
 0xa1a   :  { %v3346_v2 = vpop.f32.mrb[19].mxu1 }
 0xa1d   :  { %v1699_v3 = vpop.f32.mrb[20].mxu1 }
 0xa1e   :  { %v1704_v5 = vmul.f32 0.35355338, %v1699_v3  ;;  %v3356_v6 = vpop.f32.mrb[21].mxu1 }
 0xa20   :  { %v1706_v8 = vadd.f32 %v1704_v5, %v3751_v38 }
 0xa22   :  { %v1710_v9 = vsel %vm214_vm2, %v1706_v8, -inf }
 0xa23   :  { %1711 = vmax.xlane.f32.xlu1 %v1710_v9 }
 0xa34   :  { %1805 = vrot.lane.b32.xlu1 %v3714_v25, %s3583_s12 }
 0xa38   :  { %1883 = vrot.lane.b32.xlu1 %v3712_v22, %s3584_s13 }
 0xa3c   :  { %1961 = vrot.lane.b32.xlu1 %v3714_v25, %s3584_s13 }
 0xa40   :  { %1959 = vrot.lane.b32.xlu1 %v3729_v28, %s3584_s13 }
 0xa4e   :  { %v3912_v10 = vpop.f32.mrb[18].mxu0 }
 0xa4f   :  { %v3466_v11 = vpack.i.bf16 %v3900_v1, %v3912_v10  ;;  %v3341_v12 = vpop.f32.mrb[19].mxu0  ;;  %v3499_v10 = vld [vmem:[%s4117_s7] sm:$0xff]  }
 0xa52   :  { %v1621_v13 = vpop.f32.mrb[20].mxu0 }
 0xa53   :  { %v1703_v14 = vmul.f32 0.35355338, %v1621_v13  ;;  %v3351_v15 = vpop.f32.mrb[21].mxu0 }
 0xa55   :  { %v1705_v16 = vadd.f32 %v1703_v14, %v3745_v33 }
 0xa57   :  { %v1707_v17 = vsel %vm214_vm2, %v1705_v16, -inf }
 0xa58   :  { %1708 = vmax.xlane.f32.xlu0 %v1707_v17 }
 0xab0   :  { %v1712_v19 = vpop.xlane.xlu1 %1711 }
 0xab1   :  { %v1714_v20 = vsub.f32 %v1706_v8, %v1712_v19 }
 0xab3   :  { %v1717_v21 = vmul.f32 1.442695, %v1714_v20 }
 0xab4   :  { %v1806_v23 = vpop.permute.xlu1 %1805 }
 0xab5   :  { %3535 = vpow2.f32 %v1717_v21  ;;  %3363 = vmatpush3.msra.mxu1 %v1806_v23 }
 0xab6   :  { %3372 = vmatprep.subr.mxu1 %v3573_v0 }
 0xab8   :  { %v1884_v40 = vpop.permute.xlu1 %1883 }
 0xabc   :  { %v1962_v43 = vpop.permute.xlu1 %1961 }
 0xabf   :  { %v3536_v24 = vpop.eup %3535 }
 0xac0   :  { %v1722_v26 = vsel %vm214_vm2, %v3536_v24, 0.0  ;;  %v1960_v45 = vpop.permute.xlu1 %1959 }
 0xac1   :  { %1723 = vadd.xlane.f32.xlu0 %v1722_v26 }
 0xad7   :  { %1729 = vrot.lane.b32.xlu0 %v3712_v22, %s3583_s12 }
 0xae5   :  { %v1709_v31 = vpop.xlane.xlu0 %1708 }
 0xae6   :  { %v1713_v32 = vsub.f32 %v1705_v16, %v1709_v31 }
 0xae8   :  { %v1715_v34 = vmul.f32 1.442695, %v1713_v32 }
 0xaea   :  { %3537 = vpow2.f32 %v1715_v34 }
 0xaf4   :  { %v3538_v35 = vpop.eup %3537 }
 0xaf5   :  { %v1719_v36 = vsel %vm214_vm2, %v3538_v35, 0.0 }
 0xaf6   :  { %1720 = vadd.xlane.f32.xlu0 %v1719_v36 }
 0xb0c   :  { %1881 = vrot.lane.b32.xlu0 %v3718_v27, %s3584_s13 }
 0xb4e   :  { %v1724_v37 = vpop.xlane.xlu0 %1723 }
 0xb4f   :  { %3539 = vrcp.f32 %v1724_v37 }
 0xb52   :  { %v1730_v39 = vpop.permute.xlu0 %1729 }
 0xb53   :  { %3358 = vmatpush3.msra.mxu0 %v1730_v39 }
 0xb54   :  { %3367 = vmatprep.subr.mxu0 %v3573_v0 }
 0xb59   :  { %v3540_v41 = vpop.eup %3539 }
 0xb5a   :  { %v1728_v44 = vmul.f32 %v3540_v41, %v3536_v24 }
 0xb5c   :  { %3365 = vmatmul.mubr.msk.f32.vlgmr.msra.gmra.mrb[22].mxu1 %vm214_vm2, %v1728_v44 }
 0xb5d   :  { %3373 = vmatpush3.xpose.msk.msra.mxu1 %vm214_vm2, %v1962_v43  ;;  %3374 = vmatprep.mubr.msk.f32.mxu1 %vm3574_vm0, %v3573_v0 }
 0xb5e   :  { %3382 = vmatprep.subr.mxu1 %v3573_v0 }
 0xb60   :  { %3375 = vmatmul.mubr.msk.f32.vlgmr.msra.gmra.mrb[24].mxu1 %vm214_vm2, %v1960_v45 }
 0xb61   :  { %3384 = vmatprep.mubr.msk.f32.mxu1 %vm3574_vm0, %v3573_v0 }
 0xb83   :  { %v1721_v46 = vpop.xlane.xlu0 %1720 }
 0xb84   :  { %3541 = vrcp.f32 %v1721_v46 }
 0xb87   :  { %v1882_v51 = vpop.permute.xlu0 %1881 }
 0xb8e   :  { %v3542_v47 = vpop.eup %3541 }
 0xb8f   :  { %v1727_v48 = vmul.f32 %v3542_v47, %v3538_v35 }
 0xb91   :  { %3360 = vmatmul.mubr.msk.f32.vlgmr.msra.gmra.mrb[22].mxu0 %vm214_vm2, %v1727_v48 }
 0xb92   :  { %3368 = vmatpush3.xpose.msk.msra.mxu0 %vm214_vm2, %v1884_v40  ;;  %3369 = vmatprep.mubr.msk.f32.mxu0 %vm3574_vm0, %v3573_v0 }
 0xb93   :  { %3377 = vmatprep.subr.mxu0 %v3573_v0 }
 0xb95   :  { %3370 = vmatmul.mubr.msk.f32.vlgmr.msra.gmra.mrb[24].mxu0 %vm214_vm2, %v1882_v51 }
 0xb96   :  { %3379 = vmatprep.mubr.msk.f32.mxu0 %vm3574_vm0, %v3573_v0 }
 0xc2f   :  { %v3942_v52 = vpop.f32.mrb[22].mxu1 }
 0xc30   :  { %v3366_v53 = vpop.f32.mrb[23].mxu1 }
 0xc33   :  { %v2033_v54 = vpop.f32.mrb[24].mxu1 }
 0xc34   :  { %v2038_v55 = vmul.f32 0.35355338, %v2033_v54  ;;  %v3376_v56 = vpop.f32.mrb[25].mxu1 }
 0xc36   :  { %v2040_v57 = vadd.f32 %v2038_v55, %v3751_v38 }
 0xc38   :  { %v2044_v58 = vsel %vm214_vm2, %v2040_v57, -inf }
 0xc39   :  { %2045 = vmax.xlane.f32.xlu1 %v2044_v58 }
 0xc4a   :  { %2139 = vrot.lane.b32.xlu1 %v3714_v25, %s3585_s14 }
 0xc4e   :  { %2217 = vrot.lane.b32.xlu1 %v3712_v22, %s3586_s15 }
 0xc52   :  { %2295 = vrot.lane.b32.xlu1 %v3714_v25, %s3586_s15 }
 0xc56   :  { %2293 = vrot.lane.b32.xlu1 %v3729_v28, %s3586_s15 }
 0xc64   :  { %v3954_v59 = vpop.f32.mrb[22].mxu0 }
 0xc65   :  { %v3471_v60 = vpack.i.bf16 %v3942_v52, %v3954_v59  ;;  %v3361_v61 = vpop.f32.mrb[23].mxu0 }
 0xc68   :  { %v1955_v62 = vpop.f32.mrb[24].mxu0 }
 0xc69   :  { %v2037_v63 = vmul.f32 0.35355338, %v1955_v62  ;;  %v3371_v2 = vpop.f32.mrb[25].mxu0 }
 0xc6b   :  { %v2039_v3 = vadd.f32 %v2037_v63, %v3745_v33 }
 0xc6d   :  { %v2041_v5 = vsel %vm214_vm2, %v2039_v3, -inf }
 0xc6e   :  { %2042 = vmax.xlane.f32.xlu0 %v2041_v5 }
 0xcc6   :  { %v2046_v6 = vpop.xlane.xlu1 %2045 }
 0xcc7   :  { %v2048_v8 = vsub.f32 %v2040_v57, %v2046_v6 }
 0xcc9   :  { %v2051_v9 = vmul.f32 1.442695, %v2048_v8 }
 0xcca   :  { %v2140_v12 = vpop.permute.xlu1 %2139 }
 0xccb   :  { %3543 = vpow2.f32 %v2051_v9  ;;  %3383 = vmatpush3.msra.mxu1 %v2140_v12 }
 0xccc   :  { %3392 = vmatprep.subr.mxu1 %v3573_v0 }
 0xcce   :  { %v2218_v24 = vpop.permute.xlu1 %2217 }
 0xcd2   :  { %v2296_v31 = vpop.permute.xlu1 %2295 }
 0xcd5   :  { %v3544_v13 = vpop.eup %3543 }
 0xcd6   :  { %v2056_v14 = vsel %vm214_vm2, %v3544_v13, 0.0  ;;  %v2294_v34 = vpop.permute.xlu1 %2293 }
 0xcd7   :  { %2057 = vadd.xlane.f32.xlu0 %v2056_v14 }
 0xced   :  { %2063 = vrot.lane.b32.xlu0 %v3712_v22, %s3585_s14 }
 0xcfb   :  { %v2043_v15 = vpop.xlane.xlu0 %2042 }
 0xcfc   :  { %v2047_v16 = vsub.f32 %v2039_v3, %v2043_v15 }
 0xcfe   :  { %v2049_v17 = vmul.f32 1.442695, %v2047_v16 }
 0xd00   :  { %3545 = vpow2.f32 %v2049_v17 }
 0xd0a   :  { %v3546_v19 = vpop.eup %3545 }
 0xd0b   :  { %v2053_v20 = vsel %vm214_vm2, %v3546_v19, 0.0 }
 0xd0c   :  { %2054 = vadd.xlane.f32.xlu0 %v2053_v20 }
 0xd22   :  { %2215 = vrot.lane.b32.xlu0 %v3718_v27, %s3586_s15 }
 0xd64   :  { %v2058_v21 = vpop.xlane.xlu0 %2057 }
 0xd65   :  { %3547 = vrcp.f32 %v2058_v21 }
 0xd68   :  { %v2064_v23 = vpop.permute.xlu0 %2063 }
 0xd69   :  { %3378 = vmatpush3.msra.mxu0 %v2064_v23 }
 0xd6a   :  { %3387 = vmatprep.subr.mxu0 %v3573_v0 }
 0xd6f   :  { %v3548_v26 = vpop.eup %3547 }
 0xd70   :  { %v2062_v32 = vmul.f32 %v3548_v26, %v3544_v13 }
 0xd72   :  { %3385 = vmatmul.mubr.msk.f32.vlgmr.msra.gmra.mrb[26].mxu1 %vm214_vm2, %v2062_v32 }
 0xd73   :  { %3393 = vmatpush3.xpose.msk.msra.mxu1 %vm214_vm2, %v2296_v31  ;;  %3394 = vmatprep.mubr.msk.f32.mxu1 %vm3574_vm0, %v3573_v0 }
 0xd74   :  { %3402 = vmatprep.subr.mxu1 %v3573_v0 }
 0xd76   :  { %3395 = vmatmul.mubr.msk.f32.vlgmr.msra.gmra.mrb[28].mxu1 %vm214_vm2, %v2294_v34 }
 0xd77   :  { %3404 = vmatprep.mubr.msk.f32.mxu1 %vm3574_vm0, %v3573_v0 }
 0xd99   :  { %v2055_v35 = vpop.xlane.xlu0 %2054 }
 0xd9a   :  { %3549 = vrcp.f32 %v2055_v35 }
 0xd9d   :  { %v2216_v39 = vpop.permute.xlu0 %2215 }
 0xda4   :  { %v3550_v36 = vpop.eup %3549 }
 0xda5   :  { %v2061_v37 = vmul.f32 %v3550_v36, %v3546_v19 }
 0xda7   :  { %3380 = vmatmul.mubr.msk.f32.vlgmr.msra.gmra.mrb[26].mxu0 %vm214_vm2, %v2061_v37 }
 0xda8   :  { %3388 = vmatpush3.xpose.msk.msra.mxu0 %vm214_vm2, %v2218_v24  ;;  %3389 = vmatprep.mubr.msk.f32.mxu0 %vm3574_vm0, %v3573_v0 }
 0xda9   :  { %3397 = vmatprep.subr.mxu0 %v3573_v0 }
 0xdab   :  { %3390 = vmatmul.mubr.msk.f32.vlgmr.msra.gmra.mrb[28].mxu0 %vm214_vm2, %v2216_v39 }
 0xdac   :  { %3399 = vmatprep.mubr.msk.f32.mxu0 %vm3574_vm0, %v3573_v0 }
 0xe45   :  { %v3984_v40 = vpop.f32.mrb[26].mxu1 }
 0xe46   :  { %v3386_v41 = vpop.f32.mrb[27].mxu1 }
 0xe49   :  { %v2367_v43 = vpop.f32.mrb[28].mxu1 }
 0xe4a   :  { %v2372_v44 = vmul.f32 0.35355338, %v2367_v43  ;;  %v3396_v45 = vpop.f32.mrb[29].mxu1 }
 0xe4c   :  { %v2374_v46 = vadd.f32 %v2372_v44, %v3751_v38 }
 0xe4e   :  { %v2378_v47 = vsel %vm214_vm2, %v2374_v46, -inf }
 0xe4f   :  { %2379 = vmax.xlane.f32.xlu1 %v2378_v47 }
 0xe60   :  { %2473 = vrot.lane.b32.xlu1 %v3714_v25, %s3587_s16 }
 0xe64   :  { %2551 = vrot.lane.b32.xlu1 %v3712_v22, %s3588_s17 }
 0xe68   :  { %2629 = vrot.lane.b32.xlu1 %v3714_v25, %s3588_s17 }
 0xe6c   :  { %2627 = vrot.lane.b32.xlu1 %v3729_v28, %s3588_s17 }
 0xe7a   :  { %v3996_v48 = vpop.f32.mrb[26].mxu0 }
 0xe7b   :  { %v3476_v51 = vpack.i.bf16 %v3984_v40, %v3996_v48  ;;  %v3381_v53 = vpop.f32.mrb[27].mxu0  ;;  %v3501_v40 = vld [vmem:[%s4117_s7 + $0x10] sm:$0xff]  }
 0xe7e   :  { %v2289_v54 = vpop.f32.mrb[28].mxu0 }
 0xe7f   :  { %v2371_v55 = vmul.f32 0.35355338, %v2289_v54  ;;  %v3391_v56 = vpop.f32.mrb[29].mxu0 }
 0xe81   :  { %v2373_v57 = vadd.f32 %v2371_v55, %v3745_v33 }
 0xe83   :  { %v2375_v58 = vsel %vm214_vm2, %v2373_v57, -inf }
 0xe84   :  { %2376 = vmax.xlane.f32.xlu0 %v2375_v58  ;;  %v3502_v58 = vld [vmem:[%s4117_s7 + $0x18] sm:$0xff]  }
 0xedc   :  { %v2380_v61 = vpop.xlane.xlu1 %2379 }
 0xedd   :  { %v2382_v62 = vsub.f32 %v2374_v46, %v2380_v61 }
 0xedf   :  { %v2385_v63 = vmul.f32 1.442695, %v2382_v62 }
 0xee0   :  { %v2474_v2 = vpop.permute.xlu1 %2473 }
 0xee1   :  { %3551 = vpow2.f32 %v2385_v63  ;;  %3403 = vmatpush3.msra.mxu1 %v2474_v2 }
 0xee2   :  { %3412 = vmatprep.subr.mxu1 %v3573_v0 }
 0xee4   :  { %v2552_v15 = vpop.permute.xlu1 %2551 }
 0xee8   :  { %v2630_v17 = vpop.permute.xlu1 %2629 }
 0xeeb   :  { %v3552_v28 = vpop.eup %3551 }
 0xeec   :  { %v2390_v3 = vsel %vm214_vm2, %v3552_v28, 0.0 }
 0xeed   :  { %2391 = vadd.xlane.f32.xlu0 %v2390_v3 }
 0xf03   :  { %2397 = vrot.lane.b32.xlu0 %v3712_v22, %s3587_s16 }
 0xf11   :  { %v2377_v5 = vpop.xlane.xlu0 %2376 }
 0xf12   :  { %v2381_v6 = vsub.f32 %v2373_v57, %v2377_v5 }
 0xf14   :  { %v2383_v8 = vmul.f32 1.442695, %v2381_v6 }
 0xf16   :  { %3553 = vpow2.f32 %v2383_v8 }
 0xf20   :  { %v3554_v9 = vpop.eup %3553 }
 0xf21   :  { %v2387_v12 = vsel %vm214_vm2, %v3554_v9, 0.0 }
 0xf22   :  { %2388 = vadd.xlane.f32.xlu0 %v2387_v12 }
 0xf38   :  { %2549 = vrot.lane.b32.xlu0 %v3718_v27, %s3588_s17  ;;  %v2628_v27 = vpop.permute.xlu1 %2627 }
 0xf7a   :  { %v2392_v13 = vpop.xlane.xlu0 %2391 }
 0xf7b   :  { %3555 = vrcp.f32 %v2392_v13 }
 0xf7e   :  { %v2398_v14 = vpop.permute.xlu0 %2397 }
 0xf7f   :  { %3398 = vmatpush3.msra.mxu0 %v2398_v14 }
 0xf80   :  { %3407 = vmatprep.subr.mxu0 %v3573_v0 }
 0xf85   :  { %v3556_v16 = vpop.eup %3555 }
 0xf86   :  { %v2396_v19 = vmul.f32 %v3556_v16, %v3552_v28 }
 0xf88   :  { %3405 = vmatmul.mubr.msk.f32.vlgmr.msra.gmra.mrb[30].mxu1 %vm214_vm2, %v2396_v19 }
 0xf89   :  { %3413 = vmatpush3.xpose.msk.msra.mxu1 %vm214_vm2, %v2630_v17  ;;  %3414 = vmatprep.mubr.msk.f32.mxu1 %vm3574_vm0, %v3573_v0 }
 0xf8a   :  { %3422 = vmatprep.subr.mxu1 %v3573_v0 }
 0xf8c   :  { %3415 = vmatmul.mubr.msk.f32.vlgmr.msra.gmra.mrb[32].mxu1 %vm214_vm2, %v2628_v27 }
 0xf8d   :  { %3424 = vmatprep.mubr.msk.f32.mxu1 %vm3574_vm0, %v3573_v0 }
 0xfaf   :  { %v2389_v20 = vpop.xlane.xlu0 %2388 }
 0xfb0   :  { %3557 = vrcp.f32 %v2389_v20 }
 0xfb3   :  { %v2550_v24 = vpop.permute.xlu0 %2549 }
 0xfba   :  { %v3558_v21 = vpop.eup %3557 }
 0xfbb   :  { %v2395_v23 = vmul.f32 %v3558_v21, %v3554_v9 }
 0xfbd   :  { %3400 = vmatmul.mubr.msk.f32.vlgmr.msra.gmra.mrb[30].mxu0 %vm214_vm2, %v2395_v23 }
 0xfbe   :  { %3408 = vmatpush3.xpose.msk.msra.mxu0 %vm214_vm2, %v2552_v15  ;;  %3409 = vmatprep.mubr.msk.f32.mxu0 %vm3574_vm0, %v3573_v0 }
 0xfbf   :  { %3417 = vmatprep.subr.mxu0 %v3573_v0 }
 0xfc1   :  { %3410 = vmatmul.mubr.msk.f32.vlgmr.msra.gmra.mrb[32].mxu0 %vm214_vm2, %v2550_v24 }
 0xfc2   :  { %3419 = vmatprep.mubr.msk.f32.mxu0 %vm3574_vm0, %v3573_v0 }
0x105b   :  { %v2545_v26 = vpop.f32.mrb[30].mxu1 }
0x105c   :  { %v3406_v31 = vpop.f32.mrb[31].mxu1 }
0x105f   :  { %v2701_v32 = vpop.f32.mrb[32].mxu1 }
0x1060   :  { %v2706_v34 = vmul.f32 0.35355338, %v2701_v32  ;;  %v3416_v35 = vpop.f32.mrb[33].mxu1 }
0x1062   :  { %v2708_v36 = vadd.f32 %v2706_v34, %v3751_v38 }
0x1064   :  { %v2712_v37 = vsel %vm214_vm2, %v2708_v36, -inf }
0x1065   :  { %2713 = vmax.xlane.f32.xlu1 %v2712_v37 }
0x1076   :  { %2807 = vrot.lane.b32.xlu1 %v3714_v25, %s3589_s18 }
0x107a   :  { %3457 = vrot.lane.b32.xlu1 %v3456_v50, %s3589_s18 }
0x107e   :  { %3462 = vrot.lane.b32.xlu1 %v3461_v30, %s3587_s16 }
0x1082   :  { %3472 = vrot.lane.b32.xlu1 %v3471_v60, %s3583_s12 }
0x1090   :  { %v2469_v38 = vpop.f32.mrb[30].mxu0 }
0x1091   :  { %v3481_v39 = vpack.i.bf16 %v2545_v26, %v2469_v38  ;;  %v3401_v41 = vpop.f32.mrb[31].mxu0 }
0x1093   :  { %3482 = vrot.lane.b32.xlu1 %v3481_v39, %s3579_s28 }
0x1094   :  { %v2623_v25 = vpop.f32.mrb[32].mxu0 }
0x1095   :  { %v2705_v43 = vmul.f32 0.35355338, %v2623_v25  ;;  %v3411_v44 = vpop.f32.mrb[33].mxu0 }
0x1097   :  { %v2707_v42 = vadd.f32 %v2705_v43, %v3745_v33 }
0x1099   :  { %v2709_v49 = vsel %vm214_vm2, %v2707_v42, -inf }
0x109a   :  { %2710 = vmax.xlane.f32.xlu0 %v2709_v49  ;;  %v3156_v49 = vld [vmem:[%s4118_s8] ss:$0 sm:$0xff] }
0x10f2   :  { %v2714_v50 = vpop.xlane.xlu1 %2713 }
0x10f3   :  { %v2716_v18 = vsub.f32 %v2708_v36, %v2714_v50 }
0x10f5   :  { %v2719_v29 = vmul.f32 1.442695, %v2716_v18 }
0x10f6   :  { %v2808_v30 = vpop.permute.xlu1 %2807 }
0x10f7   :  { %3559 = vpow2.f32 %v2719_v29  ;;  %3423 = vmatpush3.msra.mxu1 %v2808_v30 }
0x10fa   :  { %v3458_v2 = vpop.permute.xlu1 %3457 }
0x10fb   :  { %v3460_v5 = vunpack.i.h.bf16 %v3458_v2  ;;  %v3459_v6 = vunpack.i.l.bf16 %v3458_v2 }
0x10fd   :  { %v2940_v15 = vsel %vm214_vm2, %v3784_v7, %v3460_v5  ;;  %v2939_v16 = vsel %vm214_vm2, %v3781_v4, %v3459_v6  ;;  %v3163_v6 = vld [vmem:[%s4120_s10] ss:$0 sm:$0xff] }
0x10fe   :  { %v3463_v28 = vpop.permute.xlu1 %3462 }
0x10ff   :  { %v3465_v8 = vunpack.i.h.bf16 %v3463_v28  ;;  %v3464_v9 = vunpack.i.l.bf16 %v3463_v28 }
0x1101   :  { %v3560_v52 = vpop.eup %3559  ;;  %v2942_v17 = vsel %vm2941_vm3, %v2939_v16, %v3464_v9  ;;  %v2943_v19 = vsel %vm2941_vm3, %v2940_v15, %v3465_v8 }
0x1102   :  { %v2724_v59 = vsel %vm214_vm2, %v3560_v52, 0.0 }
0x1103   :  { %2725 = vadd.xlane.f32.xlu0 %v2724_v59 }
0x1127   :  { %v2711_v60 = vpop.xlane.xlu0 %2710 }
0x1128   :  { %v2715_v45 = vsub.f32 %v2707_v42, %v2711_v60  ;;  %v3571_v60 = vld [vmem:[%s4112_s0] sm:$0xff] }
0x112a   :  { %v2717_v46 = vmul.f32 1.442695, %v2715_v45 }
0x112c   :  { %3561 = vpow2.f32 %v2717_v46 }
0x1136   :  { %v3562_v47 = vpop.eup %3561 }
0x1137   :  { %v2721_v33 = vsel %vm214_vm2, %v3562_v47, 0.0 }
0x1138   :  { %2722 = vadd.xlane.f32.xlu0 %v2721_v33 }
0x114e   :  { %2731 = vrot.lane.b32.xlu0 %v3712_v22, %s3589_s18 }
0x1152   :  { %3467 = vrot.lane.b32.xlu0 %v3466_v11, %s3585_s14  ;;  %v3500_v11 = vld [vmem:[%s4117_s7 + $0x8] sm:$0xff]  }
0x1156   :  { %3477 = vrot.lane.b32.xlu0 %v3476_v51, %s3581_s30 }
0x1190   :  { %v2726_v53 = vpop.xlane.xlu0 %2725 }
0x1191   :  { %3563 = vrcp.f32 %v2726_v53 }
0x119b   :  { %v3564_v54 = vpop.eup %3563 }
0x119c   :  { %v2730_v55 = vmul.f32 %v3564_v54, %v3560_v52 }
0x119e   :  { %3425 = vmatmul.mubr.msk.f32.vlgmr.msra.gmra.mrb[34].mxu1 %vm214_vm2, %v2730_v55 }
0x11c5   :  { %v2723_v56 = vpop.xlane.xlu0 %2722 }
0x11c6   :  { %3565 = vrcp.f32 %v2723_v56 }
0x11c9   :  { %v2732_v57 = vpop.permute.xlu0 %2731 }
0x11ca   :  { %3418 = vmatpush3.msra.mxu0 %v2732_v57 }
0x11cb   :  { %3427 = vmatprep.subr.bf16.mxu0 %v3573_v0 }
0x11cd   :  { %v3468_v3 = vpop.permute.xlu0 %3467 }
0x11ce   :  { %v3470_v12 = vunpack.i.h.bf16 %v3468_v3  ;;  %v3469_v13 = vunpack.i.l.bf16 %v3468_v3  ;;  %v3162_v3 = vld [vmem:[%s4119_s9] ss:$0 sm:$0xff] }
0x11d0   :  { %v3566_v22 = vpop.eup %3565  ;;  %v2945_v27 = vsel %vm2944_vm4, %v2942_v17, %v3469_v13  ;;  %v2946_v20 = vsel %vm2944_vm4, %v2943_v19, %v3470_v12 }
0x11d1   :  { %v2729_v1 = vmul.f32 %v3566_v22, %v3562_v47  ;;  %v3478_v14 = vpop.permute.xlu0 %3477  ;;  %v3572_v47 = vld [vmem:[%s4112_s0 + $0x8] sm:$0xff] }
0x11d2   :  { %v3480_v21 = vunpack.i.h.bf16 %v3478_v14  ;;  %v3479_v23 = vunpack.i.l.bf16 %v3478_v14 }
0x11d3   :  { %3420 = vmatmul.mubr.msk.f32.vlgmr.msra.gmra.mrb[34].mxu0 %vm214_vm2, %v2729_v1 }
0x11d4   :  { %3435 = vmatprep.mubr.msk.bf16.mxu0 %vm3574_vm0, %v3573_v0  ;;  %3428 = vmatpush3.bf16.msra.mxu0 %v3499_v10 }
0x11d5   :  { %3429 = vmatprep.subr.bf16.mxu0 %v3573_v0 }
0x11d8   :  { %3430 = vmatpush3.bf16.msra.mxu0 %v3500_v11 }
0x11d9   :  { %3431 = vmatprep.subr.bf16.mxu0 %v3573_v0 }
0x11dc   :  { %3432 = vmatpush3.bf16.msra.mxu0 %v3501_v40 }
0x11dd   :  { %3433 = vmatprep.subr.bf16.mxu0 %v3573_v0  ;;  %v3473_v0 = vpop.permute.xlu1 %3472 }
0x11de   :  { %v3475_v24 = vunpack.i.h.bf16 %v3473_v0  ;;  %v3474_v26 = vunpack.i.l.bf16 %v3473_v0 }
0x11e0   :  { %3434 = vmatpush3.bf16.msra.mxu0 %v3502_v58  ;;  %v2948_v32 = vsel %vm2947_vm5, %v2945_v27, %v3474_v26  ;;  %v2949_v34 = vsel %vm2947_vm5, %v2946_v20, %v3475_v24 }
0x11e1   :  { %v3483_v31 = vpop.permute.xlu1 %3482  ;;  %v2951_v35 = vsel %vm2950_vm6, %v2948_v32, %v3479_v23  ;;  %v2952_v36 = vsel %vm2950_vm6, %v2949_v34, %v3480_v21 }
0x11e2   :  { %v3485_v7 = vunpack.i.h.bf16 %v3483_v31  ;;  %v3484_v37 = vunpack.i.l.bf16 %v3483_v31 }
0x11e4   :  { %v2954_v41 = vsel %vm2953_vm7, %v2951_v35, %v3484_v37  ;;  %v2955_v25 = vsel %vm2953_vm7, %v2952_v36, %v3485_v7 }
0x1271   :  { %v2879_v48 = vpop.f32.mrb[34].mxu1 }
0x1272   :  { %v3426_v51 = vpop.f32.mrb[35].mxu1 }
0x12a6   :  { %v2803_v61 = vpop.f32.mrb[34].mxu0 }
0x12a7   :  { %v3486_v62 = vpack.i.bf16 %v2879_v48, %v2803_v61  ;;  %v3421_v63 = vpop.f32.mrb[35].mxu0 }
0x12a9   :  { %3487 = vrot.lane.b32.xlu0 %v3486_v62, %s3577_s2 }
0x131b   :  { %v3488_v4 = vpop.permute.xlu0 %3487 }
0x131c   :  { %v3490_v38 = vunpack.i.h.bf16 %v3488_v4  ;;  %v3489_v39 = vunpack.i.l.bf16 %v3488_v4 }
0x131e   :  { %v2958_v43 = vsel %vm2956_vm8, %v2955_v25, %v3490_v38  ;;  %v2957_v44 = vsel %vm2956_vm8, %v2954_v41, %v3489_v39 }
0x131f   :  { %v2959_v42 = vpack.c.bf16 %v2958_v43, %v2957_v44 }
0x1321   :  { %3436 = vmatmul.mubr.msk.bf16.vlgmr.msra.gmra.mrb[36].mxu0 %vm83_vm1, %v2959_v42 }
0x13f4   :  { %v3036_v50 = vpop.f32.mrb[36].mxu0 }
0x13f5   :  { %v3037_v18 = vadd.f32 %v3156_v49, %v3036_v50  ;;  %v3437_v29 = vpop.f32.mrb[37].mxu0 }
0x13f6   :  { %v3039_v30 = vpop.f32.mrb[38].mxu0 }
0x13f7   :  { %v3040_v52 = vadd.f32 %v3156_v49, %v3039_v30  ;;  %v3438_v59 = vpop.f32.mrb[39].mxu0  ;;  %v3043_v45 = vadd.f32 %v3571_v60, %v3037_v18 }
0x13f9   :  { %v3045_v46 = vsel %vm83_vm1, %v3043_v45, 0.0  ;;  %v3044_v33 = vadd.f32 %v3572_v47, %v3040_v52 }
0x13fa   :  { %3046 = vadd.xlane.f32.xlu1 %v3045_v46 }
0x13fb   :  { %v3048_v53 = vsel %vm83_vm1, %v3044_v33, 0.0 }
0x13fc   :  { %3049 = vadd.xlane.f32.xlu0 %v3048_v53 }
0x1487   :  { %v3047_v54 = vpop.xlane.xlu1 %3046 }
0x1488   :  { %v3052_v55 = vmul.f32 0.015625, %v3047_v54 }
0x1489   :  { %v3050_v56 = vpop.xlane.xlu0 %3049 }
0x148a   :  { %v3054_v57 = vsub.f32 %v3043_v45, %v3052_v55  ;;  %v3053_v22 = vmul.f32 0.015625, %v3050_v56 }
0x148c   :  { %v3055_v1 = vsub.f32 %v3044_v33, %v3053_v22  ;;  %v3056_v10 = vmul.f32 %v3054_v57, %v3054_v57 }
0x148e   :  { %v3058_v11 = vsel %vm83_vm1, %v3056_v10, 0.0  ;;  %v3057_v40 = vmul.f32 %v3055_v1, %v3055_v1 }
0x148f   :  { %3059 = vadd.xlane.f32.xlu0 %v3058_v11 }
0x1490   :  { %v3061_v48 = vsel %vm83_vm1, %v3057_v40, 0.0 }
0x1493   :  { %3062 = vadd.xlane.f32.xlu0 %v3061_v48 }
0x151c   :  { %v3060_v51 = vpop.xlane.xlu0 %3059 }
0x151d   :  { %v3064_v58 = vmul.f32 0.015625, %v3060_v51 }
0x151f   :  { %v3066_v61 = vadd.f32 1e-05, %v3064_v58 }
0x1520   :  { %v3063_v62 = vpop.xlane.xlu0 %3062 }
0x1521   :  { %3567 = vrsqrt.f32 %v3066_v61  ;;  %v3065_v63 = vmul.f32 0.015625, %v3063_v62 }
0x1523   :  { %v3067_v2 = vadd.f32 1e-05, %v3065_v63 }
0x1525   :  { %3569 = vrsqrt.f32 %v3067_v2 }
0x152b   :  { %v3568_v28 = vpop.eup %3567 }
0x152c   :  { %v3070_v5 = vmul.f32 %v3568_v28, %v3054_v57 }
0x152e   :  { %v3079_v8 = vmul.f32 %v3162_v3, %v3070_v5 }
0x152f   :  { %v3570_v9 = vpop.eup %3569 }
0x1530   :  { %v3088_v0 = vadd.f32 %v3163_v6, %v3079_v8  ;;  %v3071_v12 = vmul.f32 %v3570_v9, %v3055_v1 }
0x1532   :  { %3090 = vst.msk [vmem:[%s4121_s11] sm:$0xff] %vm83_vm1, %v3088_v0  ;;  %v3080_v13 = vmul.f32 %v3162_v3, %v3071_v12 }
0x1534   :  { %v3089_v14 = vadd.f32 %v3163_v6, %v3080_v13 }
0x1536   :  { %3091 = vst.msk [vmem:[%s4121_s11 + $0x8] sm:$0xff] %vm83_vm1, %v3089_v14 }

</bundles_post_ra>
